<compile_context>
chip_gen: v6e
topology: v6e:2x2x1
jax: 0.10.0
libtpu: 0.0.40
codegen_flags: <defaults>
</compile_context>

<pallas_src>
import functools

import jax
import jax.numpy as jnp
from jax.experimental import pallas as pl
from jax.experimental.pallas import tpu as pltpu


# ----------------------------------------------------------------------------
# Fused kernel: LSTM layers unrolled over time + mask + fc2 + sigmoid
# ----------------------------------------------------------------------------
def _lstm_gates_to_hc(gates, c_prev, H):
    """gates: (B, 4H) pre-activation, PyTorch gate order (i, f, g, o)."""
    sig = jax.nn.sigmoid(gates)
    i_g = sig[:, 0 * H:1 * H]
    f_g = sig[:, 1 * H:2 * H]
    o_g = sig[:, 3 * H:4 * H]
    g_g = jnp.tanh(gates[:, 2 * H:3 * H])
    c_new = f_g * c_prev + i_g * g_g
    h_new = o_g * jnp.tanh(c_new)
    return h_new, c_new


def fused_lstm_fc_kernel(num_layers, in_sz, H, O, t_max, B, offs,
                         x_ref, len_ref, slab_ref, out_ref, hs_ref):
    W4 = 4 * H
    slab = slab_ref[...]                     # one packed weight slab, one load

    def sect(name, nrows):
        s = offs[name]
        return slab[s:s + nrows, :]

    w_ih0 = sect("w_ih0", in_sz)             # (in, 4H)
    b0 = sect("b0", 1)                       # (1, 4H)
    w_hh0 = sect("w_hh0", H)                 # (H, 4H)
    w_cat = [sect(f"w_cat{l}", 2 * H) for l in range(1, num_layers)]
    b_l = [sect(f"b{l}", 1) for l in range(1, num_layers)]
    fc_w = sect("fc_w", H)                   # (H, 4H), cols >= O are zero
    fc_b = sect("fc_b", 1)                   # (1, 4H), cols >= O are zero

    # Hoisted layer-0 input projection for ALL timesteps (one MXU pass).
    x_flat = x_ref[...]                      # (B*t_max, in), rows = b*t_max + t
    gx = jnp.dot(x_flat, w_ih0, preferred_element_type=jnp.float32) + b0
    gx = gx.reshape(B, t_max, W4)

    # h0 = c0 = zeros (init_hidden)
    h = [jnp.zeros((B, H), jnp.float32) for _ in range(num_layers)]
    c = [jnp.zeros((B, H), jnp.float32) for _ in range(num_layers)]

    # Statically unrolled recurrence; t_max == max(lengths) (small here).
    # TODO(synk): for large T/H switch to lax.fori_loop with weights read from
    # refs per iteration (avoids vreg spills / giant VMEM blocks).
    for t in range(t_max):
        # Layer 0: input part precomputed, only the recurrent matmul remains.
        gates0 = gx[:, t, :] + jnp.dot(
            h[0], w_hh0, preferred_element_type=jnp.float32)
        h[0], c[0] = _lstm_gates_to_hc(gates0, c[0], H)
        # Layers >= 1: one fused [h_below, h_self] @ [W_ih; W_hh] matmul.
        for l in range(1, num_layers):
            xh = jnp.concatenate([h[l - 1], h[l]], axis=1)          # (B, 2H)
            gates = jnp.dot(
                xh, w_cat[l - 1], preferred_element_type=jnp.float32) + b_l[l - 1]
            h[l], c[l] = _lstm_gates_to_hc(gates, c[l], H)
        hs_ref[:, t:t + 1, :] = h[num_layers - 1][:, None, :]

    # Hoisted out of the loop: pad_packed_sequence zero-fill mask, fc2, sigmoid
    # as ONE batched matmul + one full-block store.
    lengths = len_ref[...]                                          # (B, 1) int32
    t_iota = jax.lax.broadcasted_iota(jnp.int32, (B, t_max), 1)     # (B, t_max)
    valid = (t_iota < lengths).astype(jnp.float32)[:, :, None]      # (B, t_max, 1)
    hs = hs_ref[...] * valid                                        # (B, t_max, H)
    hs2 = hs.reshape(B * t_max, H)                                  # rows: b*t_max + t
    y = jnp.dot(hs2, fc_w, preferred_element_type=jnp.float32) + fc_b
    out_ref[...] = jax.nn.sigmoid(y[:, :O]).astype(out_ref.dtype)


# ----------------------------------------------------------------------------
# Parameter init (deterministic, PyTorch-style uniform(-1/sqrt(H), 1/sqrt(H)))
# ----------------------------------------------------------------------------
def init_params(key, input_size, hidden_size, num_layers, output_size):
    params = {"lstm": []}
    k = 1.0 / jnp.sqrt(hidden_size)
    for layer in range(num_layers):
        in_dim = input_size if layer == 0 else hidden_size
        key, k1, k2, k3, k4 = jax.random.split(key, 5)
        # stored pre-transposed: (in, 4H) so the kernel does x @ W
        w_ih = jax.random.uniform(k1, (in_dim, 4 * hidden_size), jnp.float32, -k, k)
        w_hh = jax.random.uniform(k2, (hidden_size, 4 * hidden_size), jnp.float32, -k, k)
        b_ih = jax.random.uniform(k3, (4 * hidden_size,), jnp.float32, -k, k)
        b_hh = jax.random.uniform(k4, (4 * hidden_size,), jnp.float32, -k, k)
        params["lstm"].append(
            {"w_ih": w_ih, "w_hh": w_hh, "b": (b_ih + b_hh)[None, :]})
    key, k1, k2 = jax.random.split(key, 3)
    kf = 1.0 / jnp.sqrt(hidden_size)
    params["fc_w"] = jax.random.uniform(
        k1, (hidden_size, output_size), jnp.float32, -kf, kf)
    params["fc_b"] = jax.random.uniform(
        k2, (1, output_size), jnp.float32, -kf, kf)
    return params


# ----------------------------------------------------------------------------
# Weight packing: everything into ONE (rows, 4H) f32 slab with static offsets
# ----------------------------------------------------------------------------
def _pad_rows(a, mult=8):
    pad = (-a.shape[0]) % mult
    if pad:
        a = jnp.concatenate([a, jnp.zeros((pad, a.shape[1]), a.dtype)], axis=0)
    return a


def _pad_cols(a, width):
    pad = width - a.shape[1]
    if pad > 0:
        a = jnp.concatenate([a, jnp.zeros((a.shape[0], pad), a.dtype)], axis=1)
    return a


def pack_weights(params):
    layers = params["lstm"]
    H = layers[0]["w_hh"].shape[0]
    W4 = 4 * H
    assert params["fc_w"].shape[1] <= W4, "output_size must fit in 4*H lanes"
    sections, offs = [], {}

    def add(name, arr):
        offs[name] = sum(s.shape[0] for s in sections)
        sections.append(_pad_rows(_pad_cols(arr.astype(jnp.float32), W4)))

    add("w_ih0", layers[0]["w_ih"])
    add("b0", layers[0]["b"])
    add("w_hh0", layers[0]["w_hh"])
    for l in range(1, len(layers)):
        add(f"w_cat{l}",
            jnp.concatenate([layers[l]["w_ih"], layers[l]["w_hh"]], axis=0))
        add(f"b{l}", layers[l]["b"])
    add("fc_w", params["fc_w"])
    add("fc_b", params["fc_b"])
    return jnp.concatenate(sections, axis=0), offs


# ----------------------------------------------------------------------------
# Full forward: mirrors VanillaLSTM.forward(x, length) with ONE pallas_call
# ----------------------------------------------------------------------------
def vanilla_lstm_forward(params, x_bti, lengths_py):
    B, _, in_sz = x_bti.shape
    t_max = int(max(lengths_py))               # pad_packed_sequence total length
    layers = params["lstm"]
    num_layers = len(layers)
    H = layers[0]["w_hh"].shape[0]
    O = params["fc_w"].shape[1]

    # batch-major flatten (row = b*t_max + t); free reshape, no transpose.
    x_flat = x_bti[:, :t_max, :].reshape(B * t_max, in_sz).astype(jnp.float32)
    lengths = jnp.asarray(lengths_py, jnp.int32).reshape(B, 1)
    slab, offs = pack_weights(params)          # one packed weight slab (one DMA)
    rows, width = slab.shape

    kernel = functools.partial(
        fused_lstm_fc_kernel, num_layers, in_sz, H, O, t_max, B, offs)

    # TODO(synk): for larger batch, add a leading 'parallel' grid axis over B so
    # v7x's second TensorCore is used (weights replicate via index_map).
    out = pl.pallas_call(
        kernel,
        out_shape=jax.ShapeDtypeStruct((B * t_max, O), jnp.float32),
        grid_spec=pltpu.PrefetchScalarGridSpec(
            num_scalar_prefetch=0,
            grid=(1,),                          # single invocation; loop in-kernel
            in_specs=[
                pl.BlockSpec((B * t_max, in_sz), lambda i: (0, 0)),
                pl.BlockSpec((B, 1), lambda i: (0, 0)),
                pl.BlockSpec((rows, width), lambda i: (0, 0)),
            ],
            out_specs=pl.BlockSpec((B * t_max, O), lambda i: (0, 0)),
            scratch_shapes=[pltpu.VMEM((B, t_max, H), jnp.float32)],
        ),
        compiler_params=pltpu.CompilerParams(
            dimension_semantics=("arbitrary",),
        ),
    )(x_flat, lengths, slab)

    # rows already ordered b*t_max + t == PyTorch .view(-1, output_size)
    return out


if __name__ == "__main__":
    input_size = 8
    hidden_size = 32
    num_layers = 2
    batch_size = 2
    output_size = 2
    seq_len = 8
    lengths = [8, 5]  # sorted descending, as pack_padded_sequence requires

    key = jax.random.PRNGKey(0)
    key, pkey, xkey = jax.random.split(key, 3)
    params = init_params(pkey, input_size, hidden_size, num_layers, output_size)
    x = jax.random.normal(xkey, (batch_size, seq_len, input_size), jnp.float32)

    out = vanilla_lstm_forward(params, x, lengths)
    out = jax.block_until_ready(out)

    assert out.shape == (batch_size * max(lengths), output_size)
    assert bool(jnp.all(jnp.isfinite(out)))
    print("KERNEL_OK")
</pallas_src>

<mosaic_0001>
module attributes {stable_mosaic.version = 11 : i64} {
  func.func @fused_lstm_fc_kernel(%arg0: i32, %arg1: memref<16x8xf32, #tpu.memory_space<vmem>>, %arg2: memref<2x1xi32, #tpu.memory_space<vmem>>, %arg3: memref<160x128xf32, #tpu.memory_space<vmem>>, %arg4: memref<16x2xf32, #tpu.memory_space<vmem>>, %arg5: memref<2x8x32xf32, #tpu.memory_space<vmem>>) attributes {dimension_semantics = [#tpu.dimension_semantics<arbitrary>], iteration_bounds = array<i64: 1>, scalar_prefetch = 0 : i64, scratch_operands = 1 : i64, tpu.core_type = #tpu.core_type<tc>, window_params = [{pipeline_mode = #tpu.pipeline_mode<synchronous>, transform_indices = @transform_0, window_bounds = array<i64: 16, 8>}, {pipeline_mode = #tpu.pipeline_mode<synchronous>, transform_indices = @transform_1, window_bounds = array<i64: 2, 1>}, {pipeline_mode = #tpu.pipeline_mode<synchronous>, transform_indices = @transform_2, window_bounds = array<i64: 160, 128>}, {pipeline_mode = #tpu.pipeline_mode<synchronous>, transform_indices = @transform_3, window_bounds = array<i64: 16, 2>}]} {
    %c0 = arith.constant 0 : index
    %c0_0 = arith.constant 0 : index
    %0 = vector.load %arg3[%c0, %c0_0] : memref<160x128xf32, #tpu.memory_space<vmem>>, vector<160x128xf32>
    %1 = vector.extract_strided_slice %0 {offsets = [0, 0], sizes = [8, 128], strides = [1, 1]} : vector<160x128xf32> to vector<8x128xf32>
    %2 = vector.extract_strided_slice %0 {offsets = [8, 0], sizes = [1, 128], strides = [1, 1]} : vector<160x128xf32> to vector<1x128xf32>
    %3 = vector.extract_strided_slice %0 {offsets = [16, 0], sizes = [32, 128], strides = [1, 1]} : vector<160x128xf32> to vector<32x128xf32>
    %4 = vector.extract_strided_slice %0 {offsets = [48, 0], sizes = [64, 128], strides = [1, 1]} : vector<160x128xf32> to vector<64x128xf32>
    %5 = vector.extract_strided_slice %0 {offsets = [112, 0], sizes = [1, 128], strides = [1, 1]} : vector<160x128xf32> to vector<1x128xf32>
    %6 = vector.extract_strided_slice %0 {offsets = [120, 0], sizes = [32, 128], strides = [1, 1]} : vector<160x128xf32> to vector<32x128xf32>
    %7 = vector.extract_strided_slice %0 {offsets = [152, 0], sizes = [1, 128], strides = [1, 1]} : vector<160x128xf32> to vector<1x128xf32>
    %c0_1 = arith.constant 0 : index
    %c0_2 = arith.constant 0 : index
    %8 = vector.load %arg1[%c0_1, %c0_2] : memref<16x8xf32, #tpu.memory_space<vmem>>, vector<16x8xf32>
    %cst = arith.constant dense<0.000000e+00> : vector<16x128xf32>
    %9 = tpu.matmul %8, %1, %cst {dimension_numbers = #tpu.dot_dimension_numbers<[1], [0], [0], [1], [0, 0, 1, 1], [], []>} : vector<16x8xf32>, vector<8x128xf32>, vector<16x128xf32> -> vector<16x128xf32>
    %10 = vector.broadcast %2 : vector<1x128xf32> to vector<16x128xf32>
    %11 = arith.addf %9, %10 : vector<16x128xf32>
    %12 = vector.shape_cast %11 : vector<16x128xf32> to vector<2x8x128xf32>
    %cst_3 = arith.constant 0.000000e+00 : f32
    %13 = vector.broadcast %cst_3 : f32 to vector<2x32xf32>
    %cst_4 = arith.constant 0.000000e+00 : f32
    %14 = vector.broadcast %cst_4 : f32 to vector<2x32xf32>
    %cst_5 = arith.constant 0.000000e+00 : f32
    %15 = vector.broadcast %cst_5 : f32 to vector<2x32xf32>
    %cst_6 = arith.constant 0.000000e+00 : f32
    %16 = vector.broadcast %cst_6 : f32 to vector<2x32xf32>
    %17 = vector.extract_strided_slice %12 {offsets = [0, 0, 0], sizes = [2, 1, 128], strides = [1, 1, 1]} : vector<2x8x128xf32> to vector<2x1x128xf32>
    %18 = vector.shape_cast %17 : vector<2x1x128xf32> to vector<2x128xf32>
    %cst_7 = arith.constant dense<0.000000e+00> : vector<2x128xf32>
    %19 = tpu.matmul %13, %3, %cst_7 {dimension_numbers = #tpu.dot_dimension_numbers<[1], [0], [0], [1], [0, 0, 1, 1], [], []>} : vector<2x32xf32>, vector<32x128xf32>, vector<2x128xf32> -> vector<2x128xf32>
    %20 = arith.addf %18, %19 : vector<2x128xf32>
    %21 = arith.negf %20 : vector<2x128xf32>
    %22 = math.exp %21 : vector<2x128xf32>
    %cst_8 = arith.constant 1.000000e+00 : f32
    %23 = vector.broadcast %cst_8 : f32 to vector<2x128xf32>
    %24 = arith.addf %23, %22 : vector<2x128xf32>
    %25 = arith.divf %23, %24 : vector<2x128xf32>
    %26 = vector.extract_strided_slice %25 {offsets = [0, 0], sizes = [2, 32], strides = [1, 1]} : vector<2x128xf32> to vector<2x32xf32>
    %27 = vector.extract_strided_slice %25 {offsets = [0, 32], sizes = [2, 32], strides = [1, 1]} : vector<2x128xf32> to vector<2x32xf32>
    %28 = vector.extract_strided_slice %25 {offsets = [0, 96], sizes = [2, 32], strides = [1, 1]} : vector<2x128xf32> to vector<2x32xf32>
    %29 = vector.extract_strided_slice %20 {offsets = [0, 64], sizes = [2, 32], strides = [1, 1]} : vector<2x128xf32> to vector<2x32xf32>
    %30 = math.tanh %29 : vector<2x32xf32>
    %31 = arith.mulf %27, %15 : vector<2x32xf32>
    %32 = arith.mulf %26, %30 : vector<2x32xf32>
    %33 = arith.addf %31, %32 : vector<2x32xf32>
    %34 = math.tanh %33 : vector<2x32xf32>
    %35 = arith.mulf %28, %34 : vector<2x32xf32>
    %36 = tpu.concatenate %35, %14 in 1 : vector<2x32xf32>, vector<2x32xf32> -> vector<2x64xf32>
    %cst_9 = arith.constant dense<0.000000e+00> : vector<2x128xf32>
    %37 = tpu.matmul %36, %4, %cst_9 {dimension_numbers = #tpu.dot_dimension_numbers<[1], [0], [0], [1], [0, 0, 1, 1], [], []>} : vector<2x64xf32>, vector<64x128xf32>, vector<2x128xf32> -> vector<2x128xf32>
    %38 = vector.broadcast %5 : vector<1x128xf32> to vector<2x128xf32>
    %39 = arith.addf %37, %38 : vector<2x128xf32>
    %40 = arith.negf %39 : vector<2x128xf32>
    %41 = math.exp %40 : vector<2x128xf32>
    %cst_10 = arith.constant 1.000000e+00 : f32
    %42 = vector.broadcast %cst_10 : f32 to vector<2x128xf32>
    %43 = arith.addf %42, %41 : vector<2x128xf32>
    %44 = arith.divf %42, %43 : vector<2x128xf32>
    %45 = vector.extract_strided_slice %44 {offsets = [0, 0], sizes = [2, 32], strides = [1, 1]} : vector<2x128xf32> to vector<2x32xf32>
    %46 = vector.extract_strided_slice %44 {offsets = [0, 32], sizes = [2, 32], strides = [1, 1]} : vector<2x128xf32> to vector<2x32xf32>
    %47 = vector.extract_strided_slice %44 {offsets = [0, 96], sizes = [2, 32], strides = [1, 1]} : vector<2x128xf32> to vector<2x32xf32>
    %48 = vector.extract_strided_slice %39 {offsets = [0, 64], sizes = [2, 32], strides = [1, 1]} : vector<2x128xf32> to vector<2x32xf32>
    %49 = math.tanh %48 : vector<2x32xf32>
    %50 = arith.mulf %46, %16 : vector<2x32xf32>
    %51 = arith.mulf %45, %49 : vector<2x32xf32>
    %52 = arith.addf %50, %51 : vector<2x32xf32>
    %53 = math.tanh %52 : vector<2x32xf32>
    %54 = arith.mulf %47, %53 : vector<2x32xf32>
    %55 = vector.shape_cast %54 : vector<2x32xf32> to vector<2x1x32xf32>
    %c0_11 = arith.constant 0 : index
    %c0_12 = arith.constant 0 : index
    %c0_13 = arith.constant 0 : index
    %56 = vector.load %arg5[%c0_11, %c0_12, %c0_13] : memref<2x8x32xf32, #tpu.memory_space<vmem>>, vector<2x1x32xf32>
    tpu.vector_store %arg5[%c0_11, %c0_12, %c0_13], %55 {strides = array<i32>} : memref<2x8x32xf32, #tpu.memory_space<vmem>>, vector<2x1x32xf32>,
    %57 = vector.extract_strided_slice %12 {offsets = [0, 1, 0], sizes = [2, 1, 128], strides = [1, 1, 1]} : vector<2x8x128xf32> to vector<2x1x128xf32>
    %58 = vector.shape_cast %57 : vector<2x1x128xf32> to vector<2x128xf32>
    %cst_14 = arith.constant dense<0.000000e+00> : vector<2x128xf32>
    %59 = tpu.matmul %35, %3, %cst_14 {dimension_numbers = #tpu.dot_dimension_numbers<[1], [0], [0], [1], [0, 0, 1, 1], [], []>} : vector<2x32xf32>, vector<32x128xf32>, vector<2x128xf32> -> vector<2x128xf32>
    %60 = arith.addf %58, %59 : vector<2x128xf32>
    %61 = arith.negf %60 : vector<2x128xf32>
    %62 = math.exp %61 : vector<2x128xf32>
    %cst_15 = arith.constant 1.000000e+00 : f32
    %63 = vector.broadcast %cst_15 : f32 to vector<2x128xf32>
    %64 = arith.addf %63, %62 : vector<2x128xf32>
    %65 = arith.divf %63, %64 : vector<2x128xf32>
    %66 = vector.extract_strided_slice %65 {offsets = [0, 0], sizes = [2, 32], strides = [1, 1]} : vector<2x128xf32> to vector<2x32xf32>
    %67 = vector.extract_strided_slice %65 {offsets = [0, 32], sizes = [2, 32], strides = [1, 1]} : vector<2x128xf32> to vector<2x32xf32>
    %68 = vector.extract_strided_slice %65 {offsets = [0, 96], sizes = [2, 32], strides = [1, 1]} : vector<2x128xf32> to vector<2x32xf32>
    %69 = vector.extract_strided_slice %60 {offsets = [0, 64], sizes = [2, 32], strides = [1, 1]} : vector<2x128xf32> to vector<2x32xf32>
    %70 = math.tanh %69 : vector<2x32xf32>
    %71 = arith.mulf %67, %33 : vector<2x32xf32>
    %72 = arith.mulf %66, %70 : vector<2x32xf32>
    %73 = arith.addf %71, %72 : vector<2x32xf32>
    %74 = math.tanh %73 : vector<2x32xf32>
    %75 = arith.mulf %68, %74 : vector<2x32xf32>
    %76 = tpu.concatenate %75, %54 in 1 : vector<2x32xf32>, vector<2x32xf32> -> vector<2x64xf32>
    %cst_16 = arith.constant dense<0.000000e+00> : vector<2x128xf32>
    %77 = tpu.matmul %76, %4, %cst_16 {dimension_numbers = #tpu.dot_dimension_numbers<[1], [0], [0], [1], [0, 0, 1, 1], [], []>} : vector<2x64xf32>, vector<64x128xf32>, vector<2x128xf32> -> vector<2x128xf32>
    %78 = vector.broadcast %5 : vector<1x128xf32> to vector<2x128xf32>
    %79 = arith.addf %77, %78 : vector<2x128xf32>
    %80 = arith.negf %79 : vector<2x128xf32>
    %81 = math.exp %80 : vector<2x128xf32>
    %cst_17 = arith.constant 1.000000e+00 : f32
    %82 = vector.broadcast %cst_17 : f32 to vector<2x128xf32>
    %83 = arith.addf %82, %81 : vector<2x128xf32>
    %84 = arith.divf %82, %83 : vector<2x128xf32>
    %85 = vector.extract_strided_slice %84 {offsets = [0, 0], sizes = [2, 32], strides = [1, 1]} : vector<2x128xf32> to vector<2x32xf32>
    %86 = vector.extract_strided_slice %84 {offsets = [0, 32], sizes = [2, 32], strides = [1, 1]} : vector<2x128xf32> to vector<2x32xf32>
    %87 = vector.extract_strided_slice %84 {offsets = [0, 96], sizes = [2, 32], strides = [1, 1]} : vector<2x128xf32> to vector<2x32xf32>
    %88 = vector.extract_strided_slice %79 {offsets = [0, 64], sizes = [2, 32], strides = [1, 1]} : vector<2x128xf32> to vector<2x32xf32>
    %89 = math.tanh %88 : vector<2x32xf32>
    %90 = arith.mulf %86, %52 : vector<2x32xf32>
    %91 = arith.mulf %85, %89 : vector<2x32xf32>
    %92 = arith.addf %90, %91 : vector<2x32xf32>
    %93 = math.tanh %92 : vector<2x32xf32>
    %94 = arith.mulf %87, %93 : vector<2x32xf32>
    %95 = vector.shape_cast %94 : vector<2x32xf32> to vector<2x1x32xf32>
    %c0_18 = arith.constant 0 : index
    %c1 = arith.constant 1 : index
    %c0_19 = arith.constant 0 : index
    %96 = vector.load %arg5[%c0_18, %c1, %c0_19] : memref<2x8x32xf32, #tpu.memory_space<vmem>>, vector<2x1x32xf32>
    tpu.vector_store %arg5[%c0_18, %c1, %c0_19], %95 {strides = array<i32>} : memref<2x8x32xf32, #tpu.memory_space<vmem>>, vector<2x1x32xf32>,
    %97 = vector.extract_strided_slice %12 {offsets = [0, 2, 0], sizes = [2, 1, 128], strides = [1, 1, 1]} : vector<2x8x128xf32> to vector<2x1x128xf32>
    %98 = vector.shape_cast %97 : vector<2x1x128xf32> to vector<2x128xf32>
    %cst_20 = arith.constant dense<0.000000e+00> : vector<2x128xf32>
    %99 = tpu.matmul %75, %3, %cst_20 {dimension_numbers = #tpu.dot_dimension_numbers<[1], [0], [0], [1], [0, 0, 1, 1], [], []>} : vector<2x32xf32>, vector<32x128xf32>, vector<2x128xf32> -> vector<2x128xf32>
    %100 = arith.addf %98, %99 : vector<2x128xf32>
    %101 = arith.negf %100 : vector<2x128xf32>
    %102 = math.exp %101 : vector<2x128xf32>
    %cst_21 = arith.constant 1.000000e+00 : f32
    %103 = vector.broadcast %cst_21 : f32 to vector<2x128xf32>
    %104 = arith.addf %103, %102 : vector<2x128xf32>
    %105 = arith.divf %103, %104 : vector<2x128xf32>
    %106 = vector.extract_strided_slice %105 {offsets = [0, 0], sizes = [2, 32], strides = [1, 1]} : vector<2x128xf32> to vector<2x32xf32>
    %107 = vector.extract_strided_slice %105 {offsets = [0, 32], sizes = [2, 32], strides = [1, 1]} : vector<2x128xf32> to vector<2x32xf32>
    %108 = vector.extract_strided_slice %105 {offsets = [0, 96], sizes = [2, 32], strides = [1, 1]} : vector<2x128xf32> to vector<2x32xf32>
    %109 = vector.extract_strided_slice %100 {offsets = [0, 64], sizes = [2, 32], strides = [1, 1]} : vector<2x128xf32> to vector<2x32xf32>
    %110 = math.tanh %109 : vector<2x32xf32>
    %111 = arith.mulf %107, %73 : vector<2x32xf32>
    %112 = arith.mulf %106, %110 : vector<2x32xf32>
    %113 = arith.addf %111, %112 : vector<2x32xf32>
    %114 = math.tanh %113 : vector<2x32xf32>
    %115 = arith.mulf %108, %114 : vector<2x32xf32>
    %116 = tpu.concatenate %115, %94 in 1 : vector<2x32xf32>, vector<2x32xf32> -> vector<2x64xf32>
    %cst_22 = arith.constant dense<0.000000e+00> : vector<2x128xf32>
    %117 = tpu.matmul %116, %4, %cst_22 {dimension_numbers = #tpu.dot_dimension_numbers<[1], [0], [0], [1], [0, 0, 1, 1], [], []>} : vector<2x64xf32>, vector<64x128xf32>, vector<2x128xf32> -> vector<2x128xf32>
    %118 = vector.broadcast %5 : vector<1x128xf32> to vector<2x128xf32>
    %119 = arith.addf %117, %118 : vector<2x128xf32>
    %120 = arith.negf %119 : vector<2x128xf32>
    %121 = math.exp %120 : vector<2x128xf32>
    %cst_23 = arith.constant 1.000000e+00 : f32
    %122 = vector.broadcast %cst_23 : f32 to vector<2x128xf32>
    %123 = arith.addf %122, %121 : vector<2x128xf32>
    %124 = arith.divf %122, %123 : vector<2x128xf32>
    %125 = vector.extract_strided_slice %124 {offsets = [0, 0], sizes = [2, 32], strides = [1, 1]} : vector<2x128xf32> to vector<2x32xf32>
    %126 = vector.extract_strided_slice %124 {offsets = [0, 32], sizes = [2, 32], strides = [1, 1]} : vector<2x128xf32> to vector<2x32xf32>
    %127 = vector.extract_strided_slice %124 {offsets = [0, 96], sizes = [2, 32], strides = [1, 1]} : vector<2x128xf32> to vector<2x32xf32>
    %128 = vector.extract_strided_slice %119 {offsets = [0, 64], sizes = [2, 32], strides = [1, 1]} : vector<2x128xf32> to vector<2x32xf32>
    %129 = math.tanh %128 : vector<2x32xf32>
    %130 = arith.mulf %126, %92 : vector<2x32xf32>
    %131 = arith.mulf %125, %129 : vector<2x32xf32>
    %132 = arith.addf %130, %131 : vector<2x32xf32>
    %133 = math.tanh %132 : vector<2x32xf32>
    %134 = arith.mulf %127, %133 : vector<2x32xf32>
    %135 = vector.shape_cast %134 : vector<2x32xf32> to vector<2x1x32xf32>
    %c0_24 = arith.constant 0 : index
    %c2 = arith.constant 2 : index
    %c0_25 = arith.constant 0 : index
    %136 = vector.load %arg5[%c0_24, %c2, %c0_25] : memref<2x8x32xf32, #tpu.memory_space<vmem>>, vector<2x1x32xf32>
    tpu.vector_store %arg5[%c0_24, %c2, %c0_25], %135 {strides = array<i32>} : memref<2x8x32xf32, #tpu.memory_space<vmem>>, vector<2x1x32xf32>,
    %137 = vector.extract_strided_slice %12 {offsets = [0, 3, 0], sizes = [2, 1, 128], strides = [1, 1, 1]} : vector<2x8x128xf32> to vector<2x1x128xf32>
    %138 = vector.shape_cast %137 : vector<2x1x128xf32> to vector<2x128xf32>
    %cst_26 = arith.constant dense<0.000000e+00> : vector<2x128xf32>
    %139 = tpu.matmul %115, %3, %cst_26 {dimension_numbers = #tpu.dot_dimension_numbers<[1], [0], [0], [1], [0, 0, 1, 1], [], []>} : vector<2x32xf32>, vector<32x128xf32>, vector<2x128xf32> -> vector<2x128xf32>
    %140 = arith.addf %138, %139 : vector<2x128xf32>
    %141 = arith.negf %140 : vector<2x128xf32>
    %142 = math.exp %141 : vector<2x128xf32>
    %cst_27 = arith.constant 1.000000e+00 : f32
    %143 = vector.broadcast %cst_27 : f32 to vector<2x128xf32>
    %144 = arith.addf %143, %142 : vector<2x128xf32>
    %145 = arith.divf %143, %144 : vector<2x128xf32>
    %146 = vector.extract_strided_slice %145 {offsets = [0, 0], sizes = [2, 32], strides = [1, 1]} : vector<2x128xf32> to vector<2x32xf32>
    %147 = vector.extract_strided_slice %145 {offsets = [0, 32], sizes = [2, 32], strides = [1, 1]} : vector<2x128xf32> to vector<2x32xf32>
    %148 = vector.extract_strided_slice %145 {offsets = [0, 96], sizes = [2, 32], strides = [1, 1]} : vector<2x128xf32> to vector<2x32xf32>
    %149 = vector.extract_strided_slice %140 {offsets = [0, 64], sizes = [2, 32], strides = [1, 1]} : vector<2x128xf32> to vector<2x32xf32>
    %150 = math.tanh %149 : vector<2x32xf32>
    %151 = arith.mulf %147, %113 : vector<2x32xf32>
    %152 = arith.mulf %146, %150 : vector<2x32xf32>
    %153 = arith.addf %151, %152 : vector<2x32xf32>
    %154 = math.tanh %153 : vector<2x32xf32>
    %155 = arith.mulf %148, %154 : vector<2x32xf32>
    %156 = tpu.concatenate %155, %134 in 1 : vector<2x32xf32>, vector<2x32xf32> -> vector<2x64xf32>
    %cst_28 = arith.constant dense<0.000000e+00> : vector<2x128xf32>
    %157 = tpu.matmul %156, %4, %cst_28 {dimension_numbers = #tpu.dot_dimension_numbers<[1], [0], [0], [1], [0, 0, 1, 1], [], []>} : vector<2x64xf32>, vector<64x128xf32>, vector<2x128xf32> -> vector<2x128xf32>
    %158 = vector.broadcast %5 : vector<1x128xf32> to vector<2x128xf32>
    %159 = arith.addf %157, %158 : vector<2x128xf32>
    %160 = arith.negf %159 : vector<2x128xf32>
    %161 = math.exp %160 : vector<2x128xf32>
    %cst_29 = arith.constant 1.000000e+00 : f32
    %162 = vector.broadcast %cst_29 : f32 to vector<2x128xf32>
    %163 = arith.addf %162, %161 : vector<2x128xf32>
    %164 = arith.divf %162, %163 : vector<2x128xf32>
    %165 = vector.extract_strided_slice %164 {offsets = [0, 0], sizes = [2, 32], strides = [1, 1]} : vector<2x128xf32> to vector<2x32xf32>
    %166 = vector.extract_strided_slice %164 {offsets = [0, 32], sizes = [2, 32], strides = [1, 1]} : vector<2x128xf32> to vector<2x32xf32>
    %167 = vector.extract_strided_slice %164 {offsets = [0, 96], sizes = [2, 32], strides = [1, 1]} : vector<2x128xf32> to vector<2x32xf32>
    %168 = vector.extract_strided_slice %159 {offsets = [0, 64], sizes = [2, 32], strides = [1, 1]} : vector<2x128xf32> to vector<2x32xf32>
    %169 = math.tanh %168 : vector<2x32xf32>
    %170 = arith.mulf %166, %132 : vector<2x32xf32>
    %171 = arith.mulf %165, %169 : vector<2x32xf32>
    %172 = arith.addf %170, %171 : vector<2x32xf32>
    %173 = math.tanh %172 : vector<2x32xf32>
    %174 = arith.mulf %167, %173 : vector<2x32xf32>
    %175 = vector.shape_cast %174 : vector<2x32xf32> to vector<2x1x32xf32>
    %c0_30 = arith.constant 0 : index
    %c3 = arith.constant 3 : index
    %c0_31 = arith.constant 0 : index
    %176 = vector.load %arg5[%c0_30, %c3, %c0_31] : memref<2x8x32xf32, #tpu.memory_space<vmem>>, vector<2x1x32xf32>
    tpu.vector_store %arg5[%c0_30, %c3, %c0_31], %175 {strides = array<i32>} : memref<2x8x32xf32, #tpu.memory_space<vmem>>, vector<2x1x32xf32>,
    %177 = vector.extract_strided_slice %12 {offsets = [0, 4, 0], sizes = [2, 1, 128], strides = [1, 1, 1]} : vector<2x8x128xf32> to vector<2x1x128xf32>
    %178 = vector.shape_cast %177 : vector<2x1x128xf32> to vector<2x128xf32>
    %cst_32 = arith.constant dense<0.000000e+00> : vector<2x128xf32>
    %179 = tpu.matmul %155, %3, %cst_32 {dimension_numbers = #tpu.dot_dimension_numbers<[1], [0], [0], [1], [0, 0, 1, 1], [], []>} : vector<2x32xf32>, vector<32x128xf32>, vector<2x128xf32> -> vector<2x128xf32>
    %180 = arith.addf %178, %179 : vector<2x128xf32>
    %181 = arith.negf %180 : vector<2x128xf32>
    %182 = math.exp %181 : vector<2x128xf32>
    %cst_33 = arith.constant 1.000000e+00 : f32
    %183 = vector.broadcast %cst_33 : f32 to vector<2x128xf32>
    %184 = arith.addf %183, %182 : vector<2x128xf32>
    %185 = arith.divf %183, %184 : vector<2x128xf32>
    %186 = vector.extract_strided_slice %185 {offsets = [0, 0], sizes = [2, 32], strides = [1, 1]} : vector<2x128xf32> to vector<2x32xf32>
    %187 = vector.extract_strided_slice %185 {offsets = [0, 32], sizes = [2, 32], strides = [1, 1]} : vector<2x128xf32> to vector<2x32xf32>
    %188 = vector.extract_strided_slice %185 {offsets = [0, 96], sizes = [2, 32], strides = [1, 1]} : vector<2x128xf32> to vector<2x32xf32>
    %189 = vector.extract_strided_slice %180 {offsets = [0, 64], sizes = [2, 32], strides = [1, 1]} : vector<2x128xf32> to vector<2x32xf32>
    %190 = math.tanh %189 : vector<2x32xf32>
    %191 = arith.mulf %187, %153 : vector<2x32xf32>
    %192 = arith.mulf %186, %190 : vector<2x32xf32>
    %193 = arith.addf %191, %192 : vector<2x32xf32>
    %194 = math.tanh %193 : vector<2x32xf32>
    %195 = arith.mulf %188, %194 : vector<2x32xf32>
    %196 = tpu.concatenate %195, %174 in 1 : vector<2x32xf32>, vector<2x32xf32> -> vector<2x64xf32>
    %cst_34 = arith.constant dense<0.000000e+00> : vector<2x128xf32>
    %197 = tpu.matmul %196, %4, %cst_34 {dimension_numbers = #tpu.dot_dimension_numbers<[1], [0], [0], [1], [0, 0, 1, 1], [], []>} : vector<2x64xf32>, vector<64x128xf32>, vector<2x128xf32> -> vector<2x128xf32>
    %198 = vector.broadcast %5 : vector<1x128xf32> to vector<2x128xf32>
    %199 = arith.addf %197, %198 : vector<2x128xf32>
    %200 = arith.negf %199 : vector<2x128xf32>
    %201 = math.exp %200 : vector<2x128xf32>
    %cst_35 = arith.constant 1.000000e+00 : f32
    %202 = vector.broadcast %cst_35 : f32 to vector<2x128xf32>
    %203 = arith.addf %202, %201 : vector<2x128xf32>
    %204 = arith.divf %202, %203 : vector<2x128xf32>
    %205 = vector.extract_strided_slice %204 {offsets = [0, 0], sizes = [2, 32], strides = [1, 1]} : vector<2x128xf32> to vector<2x32xf32>
    %206 = vector.extract_strided_slice %204 {offsets = [0, 32], sizes = [2, 32], strides = [1, 1]} : vector<2x128xf32> to vector<2x32xf32>
    %207 = vector.extract_strided_slice %204 {offsets = [0, 96], sizes = [2, 32], strides = [1, 1]} : vector<2x128xf32> to vector<2x32xf32>
    %208 = vector.extract_strided_slice %199 {offsets = [0, 64], sizes = [2, 32], strides = [1, 1]} : vector<2x128xf32> to vector<2x32xf32>
    %209 = math.tanh %208 : vector<2x32xf32>
    %210 = arith.mulf %206, %172 : vector<2x32xf32>
    %211 = arith.mulf %205, %209 : vector<2x32xf32>
    %212 = arith.addf %210, %211 : vector<2x32xf32>
    %213 = math.tanh %212 : vector<2x32xf32>
    %214 = arith.mulf %207, %213 : vector<2x32xf32>
    %215 = vector.shape_cast %214 : vector<2x32xf32> to vector<2x1x32xf32>
    %c0_36 = arith.constant 0 : index
    %c4 = arith.constant 4 : index
    %c0_37 = arith.constant 0 : index
    %216 = vector.load %arg5[%c0_36, %c4, %c0_37] : memref<2x8x32xf32, #tpu.memory_space<vmem>>, vector<2x1x32xf32>
    tpu.vector_store %arg5[%c0_36, %c4, %c0_37], %215 {strides = array<i32>} : memref<2x8x32xf32, #tpu.memory_space<vmem>>, vector<2x1x32xf32>,
    %217 = vector.extract_strided_slice %12 {offsets = [0, 5, 0], sizes = [2, 1, 128], strides = [1, 1, 1]} : vector<2x8x128xf32> to vector<2x1x128xf32>
    %218 = vector.shape_cast %217 : vector<2x1x128xf32> to vector<2x128xf32>
    %cst_38 = arith.constant dense<0.000000e+00> : vector<2x128xf32>
    %219 = tpu.matmul %195, %3, %cst_38 {dimension_numbers = #tpu.dot_dimension_numbers<[1], [0], [0], [1], [0, 0, 1, 1], [], []>} : vector<2x32xf32>, vector<32x128xf32>, vector<2x128xf32> -> vector<2x128xf32>
    %220 = arith.addf %218, %219 : vector<2x128xf32>
    %221 = arith.negf %220 : vector<2x128xf32>
    %222 = math.exp %221 : vector<2x128xf32>
    %cst_39 = arith.constant 1.000000e+00 : f32
    %223 = vector.broadcast %cst_39 : f32 to vector<2x128xf32>
    %224 = arith.addf %223, %222 : vector<2x128xf32>
    %225 = arith.divf %223, %224 : vector<2x128xf32>
    %226 = vector.extract_strided_slice %225 {offsets = [0, 0], sizes = [2, 32], strides = [1, 1]} : vector<2x128xf32> to vector<2x32xf32>
    %227 = vector.extract_strided_slice %225 {offsets = [0, 32], sizes = [2, 32], strides = [1, 1]} : vector<2x128xf32> to vector<2x32xf32>
    %228 = vector.extract_strided_slice %225 {offsets = [0, 96], sizes = [2, 32], strides = [1, 1]} : vector<2x128xf32> to vector<2x32xf32>
    %229 = vector.extract_strided_slice %220 {offsets = [0, 64], sizes = [2, 32], strides = [1, 1]} : vector<2x128xf32> to vector<2x32xf32>
    %230 = math.tanh %229 : vector<2x32xf32>
    %231 = arith.mulf %227, %193 : vector<2x32xf32>
    %232 = arith.mulf %226, %230 : vector<2x32xf32>
    %233 = arith.addf %231, %232 : vector<2x32xf32>
    %234 = math.tanh %233 : vector<2x32xf32>
    %235 = arith.mulf %228, %234 : vector<2x32xf32>
    %236 = tpu.concatenate %235, %214 in 1 : vector<2x32xf32>, vector<2x32xf32> -> vector<2x64xf32>
    %cst_40 = arith.constant dense<0.000000e+00> : vector<2x128xf32>
    %237 = tpu.matmul %236, %4, %cst_40 {dimension_numbers = #tpu.dot_dimension_numbers<[1], [0], [0], [1], [0, 0, 1, 1], [], []>} : vector<2x64xf32>, vector<64x128xf32>, vector<2x128xf32> -> vector<2x128xf32>
    %238 = vector.broadcast %5 : vector<1x128xf32> to vector<2x128xf32>
    %239 = arith.addf %237, %238 : vector<2x128xf32>
    %240 = arith.negf %239 : vector<2x128xf32>
    %241 = math.exp %240 : vector<2x128xf32>
    %cst_41 = arith.constant 1.000000e+00 : f32
    %242 = vector.broadcast %cst_41 : f32 to vector<2x128xf32>
    %243 = arith.addf %242, %241 : vector<2x128xf32>
    %244 = arith.divf %242, %243 : vector<2x128xf32>
    %245 = vector.extract_strided_slice %244 {offsets = [0, 0], sizes = [2, 32], strides = [1, 1]} : vector<2x128xf32> to vector<2x32xf32>
    %246 = vector.extract_strided_slice %244 {offsets = [0, 32], sizes = [2, 32], strides = [1, 1]} : vector<2x128xf32> to vector<2x32xf32>
    %247 = vector.extract_strided_slice %244 {offsets = [0, 96], sizes = [2, 32], strides = [1, 1]} : vector<2x128xf32> to vector<2x32xf32>
    %248 = vector.extract_strided_slice %239 {offsets = [0, 64], sizes = [2, 32], strides = [1, 1]} : vector<2x128xf32> to vector<2x32xf32>
    %249 = math.tanh %248 : vector<2x32xf32>
    %250 = arith.mulf %246, %212 : vector<2x32xf32>
    %251 = arith.mulf %245, %249 : vector<2x32xf32>
    %252 = arith.addf %250, %251 : vector<2x32xf32>
    %253 = math.tanh %252 : vector<2x32xf32>
    %254 = arith.mulf %247, %253 : vector<2x32xf32>
    %255 = vector.shape_cast %254 : vector<2x32xf32> to vector<2x1x32xf32>
    %c0_42 = arith.constant 0 : index
    %c5 = arith.constant 5 : index
    %c0_43 = arith.constant 0 : index
    %256 = vector.load %arg5[%c0_42, %c5, %c0_43] : memref<2x8x32xf32, #tpu.memory_space<vmem>>, vector<2x1x32xf32>
    tpu.vector_store %arg5[%c0_42, %c5, %c0_43], %255 {strides = array<i32>} : memref<2x8x32xf32, #tpu.memory_space<vmem>>, vector<2x1x32xf32>,
    %257 = vector.extract_strided_slice %12 {offsets = [0, 6, 0], sizes = [2, 1, 128], strides = [1, 1, 1]} : vector<2x8x128xf32> to vector<2x1x128xf32>
    %258 = vector.shape_cast %257 : vector<2x1x128xf32> to vector<2x128xf32>
    %cst_44 = arith.constant dense<0.000000e+00> : vector<2x128xf32>
    %259 = tpu.matmul %235, %3, %cst_44 {dimension_numbers = #tpu.dot_dimension_numbers<[1], [0], [0], [1], [0, 0, 1, 1], [], []>} : vector<2x32xf32>, vector<32x128xf32>, vector<2x128xf32> -> vector<2x128xf32>
    %260 = arith.addf %258, %259 : vector<2x128xf32>
    %261 = arith.negf %260 : vector<2x128xf32>
    %262 = math.exp %261 : vector<2x128xf32>
    %cst_45 = arith.constant 1.000000e+00 : f32
    %263 = vector.broadcast %cst_45 : f32 to vector<2x128xf32>
    %264 = arith.addf %263, %262 : vector<2x128xf32>
    %265 = arith.divf %263, %264 : vector<2x128xf32>
    %266 = vector.extract_strided_slice %265 {offsets = [0, 0], sizes = [2, 32], strides = [1, 1]} : vector<2x128xf32> to vector<2x32xf32>
    %267 = vector.extract_strided_slice %265 {offsets = [0, 32], sizes = [2, 32], strides = [1, 1]} : vector<2x128xf32> to vector<2x32xf32>
    %268 = vector.extract_strided_slice %265 {offsets = [0, 96], sizes = [2, 32], strides = [1, 1]} : vector<2x128xf32> to vector<2x32xf32>
    %269 = vector.extract_strided_slice %260 {offsets = [0, 64], sizes = [2, 32], strides = [1, 1]} : vector<2x128xf32> to vector<2x32xf32>
    %270 = math.tanh %269 : vector<2x32xf32>
    %271 = arith.mulf %267, %233 : vector<2x32xf32>
    %272 = arith.mulf %266, %270 : vector<2x32xf32>
    %273 = arith.addf %271, %272 : vector<2x32xf32>
    %274 = math.tanh %273 : vector<2x32xf32>
    %275 = arith.mulf %268, %274 : vector<2x32xf32>
    %276 = tpu.concatenate %275, %254 in 1 : vector<2x32xf32>, vector<2x32xf32> -> vector<2x64xf32>
    %cst_46 = arith.constant dense<0.000000e+00> : vector<2x128xf32>
    %277 = tpu.matmul %276, %4, %cst_46 {dimension_numbers = #tpu.dot_dimension_numbers<[1], [0], [0], [1], [0, 0, 1, 1], [], []>} : vector<2x64xf32>, vector<64x128xf32>, vector<2x128xf32> -> vector<2x128xf32>
    %278 = vector.broadcast %5 : vector<1x128xf32> to vector<2x128xf32>
    %279 = arith.addf %277, %278 : vector<2x128xf32>
    %280 = arith.negf %279 : vector<2x128xf32>
    %281 = math.exp %280 : vector<2x128xf32>
    %cst_47 = arith.constant 1.000000e+00 : f32
    %282 = vector.broadcast %cst_47 : f32 to vector<2x128xf32>
    %283 = arith.addf %282, %281 : vector<2x128xf32>
    %284 = arith.divf %282, %283 : vector<2x128xf32>
    %285 = vector.extract_strided_slice %284 {offsets = [0, 0], sizes = [2, 32], strides = [1, 1]} : vector<2x128xf32> to vector<2x32xf32>
    %286 = vector.extract_strided_slice %284 {offsets = [0, 32], sizes = [2, 32], strides = [1, 1]} : vector<2x128xf32> to vector<2x32xf32>
    %287 = vector.extract_strided_slice %284 {offsets = [0, 96], sizes = [2, 32], strides = [1, 1]} : vector<2x128xf32> to vector<2x32xf32>
    %288 = vector.extract_strided_slice %279 {offsets = [0, 64], sizes = [2, 32], strides = [1, 1]} : vector<2x128xf32> to vector<2x32xf32>
    %289 = math.tanh %288 : vector<2x32xf32>
    %290 = arith.mulf %286, %252 : vector<2x32xf32>
    %291 = arith.mulf %285, %289 : vector<2x32xf32>
    %292 = arith.addf %290, %291 : vector<2x32xf32>
    %293 = math.tanh %292 : vector<2x32xf32>
    %294 = arith.mulf %287, %293 : vector<2x32xf32>
    %295 = vector.shape_cast %294 : vector<2x32xf32> to vector<2x1x32xf32>
    %c0_48 = arith.constant 0 : index
    %c6 = arith.constant 6 : index
    %c0_49 = arith.constant 0 : index
    %296 = vector.load %arg5[%c0_48, %c6, %c0_49] : memref<2x8x32xf32, #tpu.memory_space<vmem>>, vector<2x1x32xf32>
    tpu.vector_store %arg5[%c0_48, %c6, %c0_49], %295 {strides = array<i32>} : memref<2x8x32xf32, #tpu.memory_space<vmem>>, vector<2x1x32xf32>,
    %297 = vector.extract_strided_slice %12 {offsets = [0, 7, 0], sizes = [2, 1, 128], strides = [1, 1, 1]} : vector<2x8x128xf32> to vector<2x1x128xf32>
    %298 = vector.shape_cast %297 : vector<2x1x128xf32> to vector<2x128xf32>
    %cst_50 = arith.constant dense<0.000000e+00> : vector<2x128xf32>
    %299 = tpu.matmul %275, %3, %cst_50 {dimension_numbers = #tpu.dot_dimension_numbers<[1], [0], [0], [1], [0, 0, 1, 1], [], []>} : vector<2x32xf32>, vector<32x128xf32>, vector<2x128xf32> -> vector<2x128xf32>
    %300 = arith.addf %298, %299 : vector<2x128xf32>
    %301 = arith.negf %300 : vector<2x128xf32>
    %302 = math.exp %301 : vector<2x128xf32>
    %cst_51 = arith.constant 1.000000e+00 : f32
    %303 = vector.broadcast %cst_51 : f32 to vector<2x128xf32>
    %304 = arith.addf %303, %302 : vector<2x128xf32>
    %305 = arith.divf %303, %304 : vector<2x128xf32>
    %306 = vector.extract_strided_slice %305 {offsets = [0, 0], sizes = [2, 32], strides = [1, 1]} : vector<2x128xf32> to vector<2x32xf32>
    %307 = vector.extract_strided_slice %305 {offsets = [0, 32], sizes = [2, 32], strides = [1, 1]} : vector<2x128xf32> to vector<2x32xf32>
    %308 = vector.extract_strided_slice %305 {offsets = [0, 96], sizes = [2, 32], strides = [1, 1]} : vector<2x128xf32> to vector<2x32xf32>
    %309 = vector.extract_strided_slice %300 {offsets = [0, 64], sizes = [2, 32], strides = [1, 1]} : vector<2x128xf32> to vector<2x32xf32>
    %310 = math.tanh %309 : vector<2x32xf32>
    %311 = arith.mulf %307, %273 : vector<2x32xf32>
    %312 = arith.mulf %306, %310 : vector<2x32xf32>
    %313 = arith.addf %311, %312 : vector<2x32xf32>
    %314 = math.tanh %313 : vector<2x32xf32>
    %315 = arith.mulf %308, %314 : vector<2x32xf32>
    %316 = tpu.concatenate %315, %294 in 1 : vector<2x32xf32>, vector<2x32xf32> -> vector<2x64xf32>
    %cst_52 = arith.constant dense<0.000000e+00> : vector<2x128xf32>
    %317 = tpu.matmul %316, %4, %cst_52 {dimension_numbers = #tpu.dot_dimension_numbers<[1], [0], [0], [1], [0, 0, 1, 1], [], []>} : vector<2x64xf32>, vector<64x128xf32>, vector<2x128xf32> -> vector<2x128xf32>
    %318 = vector.broadcast %5 : vector<1x128xf32> to vector<2x128xf32>
    %319 = arith.addf %317, %318 : vector<2x128xf32>
    %320 = arith.negf %319 : vector<2x128xf32>
    %321 = math.exp %320 : vector<2x128xf32>
    %cst_53 = arith.constant 1.000000e+00 : f32
    %322 = vector.broadcast %cst_53 : f32 to vector<2x128xf32>
    %323 = arith.addf %322, %321 : vector<2x128xf32>
    %324 = arith.divf %322, %323 : vector<2x128xf32>
    %325 = vector.extract_strided_slice %324 {offsets = [0, 0], sizes = [2, 32], strides = [1, 1]} : vector<2x128xf32> to vector<2x32xf32>
    %326 = vector.extract_strided_slice %324 {offsets = [0, 32], sizes = [2, 32], strides = [1, 1]} : vector<2x128xf32> to vector<2x32xf32>
    %327 = vector.extract_strided_slice %324 {offsets = [0, 96], sizes = [2, 32], strides = [1, 1]} : vector<2x128xf32> to vector<2x32xf32>
    %328 = vector.extract_strided_slice %319 {offsets = [0, 64], sizes = [2, 32], strides = [1, 1]} : vector<2x128xf32> to vector<2x32xf32>
    %329 = math.tanh %328 : vector<2x32xf32>
    %330 = arith.mulf %326, %292 : vector<2x32xf32>
    %331 = arith.mulf %325, %329 : vector<2x32xf32>
    %332 = arith.addf %330, %331 : vector<2x32xf32>
    %333 = math.tanh %332 : vector<2x32xf32>
    %334 = arith.mulf %327, %333 : vector<2x32xf32>
    %335 = vector.shape_cast %334 : vector<2x32xf32> to vector<2x1x32xf32>
    %c0_54 = arith.constant 0 : index
    %c7 = arith.constant 7 : index
    %c0_55 = arith.constant 0 : index
    %336 = vector.load %arg5[%c0_54, %c7, %c0_55] : memref<2x8x32xf32, #tpu.memory_space<vmem>>, vector<2x1x32xf32>
    tpu.vector_store %arg5[%c0_54, %c7, %c0_55], %335 {strides = array<i32>} : memref<2x8x32xf32, #tpu.memory_space<vmem>>, vector<2x1x32xf32>,
    %c0_56 = arith.constant 0 : index
    %c0_57 = arith.constant 0 : index
    %337 = vector.load %arg2[%c0_56, %c0_57] : memref<2x1xi32, #tpu.memory_space<vmem>>, vector<2x1xi32>
    %338 = tpu.iota {dimensions = array<i32: 1>} : vector<2x8xi32>
    %339 = vector.broadcast %337 : vector<2x1xi32> to vector<2x8xi32>
    %340 = arith.cmpi slt, %338, %339 : vector<2x8xi32>
    %341 = arith.extui %340 : vector<2x8xi1> to vector<2x8xi32>
    %342 = arith.sitofp %341 : vector<2x8xi32> to vector<2x8xf32>
    %343 = vector.shape_cast %342 : vector<2x8xf32> to vector<2x8x1xf32>
    %c0_58 = arith.constant 0 : index
    %c0_59 = arith.constant 0 : index
    %c0_60 = arith.constant 0 : index
    %344 = vector.load %arg5[%c0_58, %c0_59, %c0_60] : memref<2x8x32xf32, #tpu.memory_space<vmem>>, vector<2x8x32xf32>
    %345 = vector.broadcast %343 : vector<2x8x1xf32> to vector<2x8x32xf32>
    %346 = arith.mulf %344, %345 : vector<2x8x32xf32>
    %347 = vector.shape_cast %346 : vector<2x8x32xf32> to vector<16x32xf32>
    %cst_61 = arith.constant dense<0.000000e+00> : vector<16x128xf32>
    %348 = tpu.matmul %347, %6, %cst_61 {dimension_numbers = #tpu.dot_dimension_numbers<[1], [0], [0], [1], [0, 0, 1, 1], [], []>} : vector<16x32xf32>, vector<32x128xf32>, vector<16x128xf32> -> vector<16x128xf32>
    %349 = vector.broadcast %7 : vector<1x128xf32> to vector<16x128xf32>
    %350 = arith.addf %348, %349 : vector<16x128xf32>
    %351 = vector.extract_strided_slice %350 {offsets = [0, 0], sizes = [16, 2], strides = [1, 1]} : vector<16x128xf32> to vector<16x2xf32>
    %352 = arith.negf %351 : vector<16x2xf32>
    %353 = math.exp %352 : vector<16x2xf32>
    %cst_62 = arith.constant 1.000000e+00 : f32
    %354 = vector.broadcast %cst_62 : f32 to vector<16x2xf32>
    %355 = arith.addf %354, %353 : vector<16x2xf32>
    %356 = arith.divf %354, %355 : vector<16x2xf32>
    %c0_63 = arith.constant 0 : index
    %c0_64 = arith.constant 0 : index
    %357 = vector.load %arg4[%c0_63, %c0_64] : memref<16x2xf32, #tpu.memory_space<vmem>>, vector<16x2xf32>
    tpu.vector_store %arg4[%c0_63, %c0_64], %356 {strides = array<i32>} : memref<16x2xf32, #tpu.memory_space<vmem>>, vector<16x2xf32>,
    return
  }
  func.func @transform_0(%arg0: i32) -> (i32, i32) {
    %c0_i32 = arith.constant 0 : i32
    %c0_i32_0 = arith.constant 0 : i32
    %c0_i32_1 = arith.constant 0 : i32
    return %c0_i32, %c0_i32_0 : i32, i32
  }
  func.func @transform_1(%arg0: i32) -> (i32, i32) {
    %c0_i32 = arith.constant 0 : i32
    %c0_i32_0 = arith.constant 0 : i32
    %c0_i32_1 = arith.constant 0 : i32
    return %c0_i32, %c0_i32_0 : i32, i32
  }
  func.func @transform_2(%arg0: i32) -> (i32, i32) {
    %c0_i32 = arith.constant 0 : i32
    %c0_i32_0 = arith.constant 0 : i32
    %c0_i32_1 = arith.constant 0 : i32
    return %c0_i32, %c0_i32_0 : i32, i32
  }
  func.func @transform_3(%arg0: i32) -> (i32, i32) {
    %c0_i32 = arith.constant 0 : i32
    %c0_i32_0 = arith.constant 0 : i32
    %c0_i32_1 = arith.constant 0 : i32
    return %c0_i32, %c0_i32_0 : i32, i32
  }
}

</mosaic_0001>

<bundles_post_ra>
// kernel: tpu_custom_call.1
= control target key start
LH: loop header
LB: loop body
LE: loop exit
PB: predicated region body
PF: predicated region fallthrough
CT: control target
= control target key end

     0   :  { %8 = vsyncpa [#allocation4], 0  ;;  %s3229_s12 = smov [#allocation3]   ;;  %s3911_s0 = inlined_call_operand.vmem [shape: f32[16,8], index: 0, kind: input, shape index: {}]   ;;  %s3912_s1 = inlined_call_operand.vmem [shape: s32[2,1], index: 1, kind: input, shape index: {}]   ;;  %s3913_s2 = inlined_call_operand.hbm [shape: f32[160,128], index: 2, kind: input, shape index: {}]   ;;  %s3914_s3 = inlined_call_operand.vmem [shape: f32[16,2], index: 3, kind: output, shape index: {}]  }
   0x1   :  { %s18_s13 = sshll.u32 %s3229_s12, 4  ;;  %s19_s13 = int_to_ptr.vmem [resolvable:$true] %s18_s13 }
   0x2   :  { %s3215_s14 = scalar_lea.vmem %s19_s13, 2560  ;;  %p3220_p1 = scmp.lt.s32.totalorder %s19_s13, %s19_s13 }
   0x3   :  { %p3216_p0 = scmp.ne.s32.totalorder %s19_s13, %s3215_s14  ;;  %p3221_p2 = scmp.lt.s32.totalorder %s3215_s14, %s3215_s14 }
   0x5   :  { %p3222_p3 = por %p3221_p2, %p3220_p1 }
   0x7   :  { %p3223_p4 = pnand %p3222_p3, %p3216_p0 }
   0x9   :  { %3226 = shalt.err (!%p3223_p4)
}
   0xa   :  { %s3230_s15 = smov 128   ;;  %s3231_s16 = smov 8  }
   0xb   :  { %24 = dma.hbm_to_vmem [thread:$0]  %s3913_s2, 2560, %s19_s13, [#allocation4], %s3230_s15, %s3230_s15, %s3231_s16  }
   0xc   :  { %3227 = dma.done.wait [#allocation4], 2560  }
   0xd   :  { %3228 = vsyncadd [#allocation4], 4294964736  ;;  %v3232_v0 = vmov 0.0   ;;  %vm3233_vm0 = vmmov 0   ;;  %v3264_v1 = vld [vmem:[#allocation3 + $0x28] sm:$0xff]  ;;  %v28_v2 = vld [vmem:[#allocation3] sm:$0xff]  ;;  %v50_v8 = vlaneseq }
   0xe   :  { %2734 = vmatprep.subr.mxu1 %v3232_v0  ;;  %2742 = vmatprep.mubr.msk.f32.mxu1 %vm3233_vm0, %v3232_v0  ;;  %v48_v3 = vld [vmem:[%s3911_s0] sm:$0xff]  ;;  %vm54_vm1 = vcmask 64512   ;;  %v3270_v4 = vld [vmem:[#allocation3 + $0x20] sm:$0xff]  ;;  %v49_v5 = vld [vmem:[%s3911_s0 + $0x8] sm:$0xff]  ;;  %s3234_s0 = smov 64   ;;  %s3235_s22 = smov 32  }
   0xf   :  { %2735 = vmatpush3.msra.mxu1 %v3264_v1  ;;  %2729 = vmatprep.subr.mxu0 %v28_v2  ;;  %v3276_v6 = vld [vmem:[#allocation3 + $0x18] sm:$0xff]  ;;  %v3280_v7 = vld [vmem:[#allocation3 + $0x10] sm:$0xff]  ;;  %v3301_v9 = vshrl.u32 %v50_v8, 7  ;;  %v29_v11 = vld [vmem:[#allocation3 + $0x8] sm:$0xff]  ;;  %vm267_vm2 = vcmask 1041409   ;;  %vm136_vm3 = vcmask 261120  }
  0x10   :  { %2736 = vmatprep.subr.mxu1 %v3232_v0  ;;  %2730 = vmatpush3.msra.mxu0 %v28_v2  ;;  %v3323_v42 = vld [vmem:[#allocation3 + $0x68] sm:$0xff]  ;;  %v3325_v43 = vld [vmem:[#allocation3 + $0x60] sm:$0xff]  ;;  %v3329_v44 = vld [vmem:[#allocation3 + $0x58] sm:$0xff]  ;;  %vm277_vm4 = vcmask 523264   ;;  %vm550_vm5 = vcmask 1042434   ;;  %vm837_vm6 = vcmask 1043459  }
  0x11   :  { %2731 = vmatprep.mubr.msk.f32.mxu0 %vm54_vm1, %v48_v3  ;;  %2737 = vmatpush3.msra.mxu1 %v3270_v4  ;;  %v3304_v10 = vsub.s32 0, %v3301_v9  ;;  %v3333_v45 = vld [vmem:[#allocation3 + $0x50] sm:$0xff]  ;;  %v3338_v47 = vld [vmem:[#allocation3 + $0x48] sm:$0xff]  ;;  %v3342_v48 = vld [vmem:[#allocation3 + $0x40] sm:$0xff]  ;;  %vm1125_vm7 = vcmask 1044484   ;;  %vm1413_vm8 = vcmask 1045509  }
  0x12   :  { %2732 = vmatmul.mubr.msk.f32.vlgmr.msra.gmra.mxu0 %vm54_vm1, %v49_v5  ;;  %2738 = vmatprep.subr.mxu1 %v3232_v0  ;;  %v3347_v50 = vld [vmem:[#allocation3 + $0x38] sm:$0xff]  ;;  %v3353_v51 = vld [vmem:[#allocation3 + $0x30] sm:$0xff]  ;;  %vm1701_vm9 = vcmask 1046534   ;;  %vm1989_vm10 = vcmask 1047559   ;;  %vm2291_vm11 = vcmask 1040384   ;;  %vm412_vm13 = vcmask 253952  }
  0x13   :  { %2739 = vmatpush3.msra.mxu1 %v3276_v6  ;;  %2745 = vmatprep.subr.mxu0 %v3232_v0  ;;  %v53_v13 = vrot.slane %v29_v11, %v3304_v10  ;;  %v42_v60 = vld [vmem:[#allocation3 + $0x70] sm:$0xff]  ;;  %vm2554_vm14 = vcmask 15360  }
  0x14   :  { %2740 = vmatprep.subr.mxu1 %v3232_v0  ;;  %2761 = vmatprep.mubr.msk.f32.mxu0 %vm3233_vm0, %v3232_v0  ;;  %v3392_v3 = vrot.slane %v42_v60, %v3304_v10 }
  0x15   :  { %2741 = vmatpush3.msra.mxu1 %v3280_v7  ;;  %2746 = vmatpush3.msra.mxu0 %v3323_v42 }
  0x16   :  { %2743 = vmatmul.mubr.f32.vlgmr.msra.gmra.mxu1 %v3232_v0  ;;  %2764 = vmatprep.subr.mxu1 %v3232_v0 }
  0x17   :  { %2765 = vmatpush3.msra.mxu1 %v3264_v1  ;;  %2772 = vmatprep.mubr.msk.f32.mxu1 %vm3233_vm0, %v3232_v0 }
  0x18   :  { %2766 = vmatprep.subr.mxu1 %v3232_v0  ;;  %2747 = vmatprep.subr.mxu0 %v3232_v0 }
  0x19   :  { %2767 = vmatpush3.msra.mxu1 %v3270_v4  ;;  %2748 = vmatpush3.msra.mxu0 %v3325_v43 }
  0x1a   :  { %2768 = vmatprep.subr.mxu1 %v3232_v0  ;;  %2749 = vmatprep.subr.mxu0 %v3232_v0 }
  0x1b   :  { %2769 = vmatpush3.msra.mxu1 %v3276_v6  ;;  %2750 = vmatpush3.msra.mxu0 %v3329_v44 }
  0x1c   :  { %2770 = vmatprep.subr.mxu1 %v3232_v0  ;;  %2751 = vmatprep.subr.mxu0 %v3232_v0 }
  0x1d   :  { %2771 = vmatpush3.msra.mxu1 %v3280_v7  ;;  %2752 = vmatpush3.msra.mxu0 %v3333_v45 }
  0x1e   :  { %2775 = vmatprep.subr.mxu1 %v3232_v0  ;;  %2753 = vmatprep.subr.mxu0 %v3232_v0 }
  0x1f   :  { %2754 = vmatpush3.msra.mxu0 %v3338_v47 }
  0x20   :  { %2755 = vmatprep.subr.mxu0 %v3232_v0 }
  0x21   :  { %2756 = vmatpush3.msra.mxu0 %v3342_v48 }
  0x22   :  { %2757 = vmatprep.subr.mxu0 %v3232_v0 }
  0x23   :  { %2758 = vmatpush3.msra.mxu0 %v3347_v50 }
  0x24   :  { %2759 = vmatprep.subr.mxu0 %v3232_v0 }
  0x25   :  { %2760 = vmatpush3.msra.mxu0 %v3353_v51 }
  0x26   :  { %2794 = vmatprep.subr.mxu0 %v3232_v0 }
  0xd2   :  { %v2733_v12 = vpop.f32.mrf.mxu0 }
  0xd3   :  { %v3307_v14 = vadd.f32 %v2733_v12, %v53_v13 }
  0xd4   :  { %v127_v15 = vpop.f32.mrf.mxu0 }
  0xd5   :  { %v3309_v18 = vadd.f32 %v127_v15, %v53_v13 }
  0xd6   :  { %v206_v16 = vpop.f32.mrf.mxu1 }
  0xd7   :  { %v211_v17 = vrot.slane %v206_v16, 1  ;;  %v214_v21 = vadd.f32 %v206_v16, %v3309_v18 }
  0xd8   :  { %v2744_v19 = vpop.f32.mrf.mxu1 }
  0xd9   :  { %v215_v20 = vadd.f32 %v211_v17, %v3307_v14  ;;  %v2564_v25 = vmul.f32 -1.442695, %v214_v21 }
  0xdb   :  { %2995 = vtanh.f32 %v215_v20  ;;  %v2565_v24 = vmul.f32 -1.442695, %v215_v20 }
  0xdc   :  { %2997 = vtanh.f32 %v214_v21 }
  0xdd   :  { %2999 = vpow2.f32 %v2565_v24 }
  0xde   :  { %3001 = vpow2.f32 %v2564_v25 }
  0xe8   :  { %v2996_v22 = vpop.eup %2995 }
  0xe9   :  { %236 = vrot.lane.b32.xlu0 %v2996_v22, %s3234_s0  ;;  %v2998_v23 = vpop.eup %2997 }
  0xea   :  { %v3000_v26 = vpop.eup %2999 }
  0xeb   :  { %v223_v27 = vadd.f32 1.0, %v3000_v26  ;;  %v3002_v28 = vpop.eup %3001 }
  0xec   :  { %v222_v29 = vadd.f32 1.0, %v3002_v28 }
  0xed   :  { %234 = vrot.lane.b32.xlu0 %v2998_v23, %s3234_s0  ;;  %3003 = vrcp.f32 %v223_v27 }
  0xee   :  { %3005 = vrcp.f32 %v222_v29 }
  0xfa   :  { %v3004_v30 = vpop.eup %3003 }
  0xfb   :  { %v3006_v33 = vpop.eup %3005  ;;  %v231_v36 = vmul.f32 0.0, %v3004_v30 }
  0xfc   :  { %v230_v39 = vmul.f32 0.0, %v3006_v33 }
 0x15b   :  { %v237_v31 = vpop.permute.xlu0 %236 }
 0x15c   :  { %v241_v32 = vmul.f32 %v3004_v30, %v237_v31 }
 0x15e   :  { %246 = vrot.lane.b32.xlu1 %v241_v32, %s3235_s22 }
 0x15f   :  { %v235_v34 = vpop.permute.xlu0 %234 }
 0x160   :  { %v240_v35 = vmul.f32 %v3006_v33, %v235_v34 }
 0x162   :  { %244 = vrot.lane.b32.xlu1 %v240_v35, %s3235_s22 }
 0x1d0   :  { %v247_v37 = vpop.permute.xlu1 %246 }
 0x1d1   :  { %v3317_v38 = vadd.f32 %v247_v37, %v231_v36 }
 0x1d3   :  { %3007 = vtanh.f32 %v3317_v38  ;;  %v510_v37 = vrot.slane %v3317_v38, 7 }
 0x1d4   :  { %v245_v40 = vpop.permute.xlu1 %244 }
 0x1d5   :  { %v3320_v41 = vadd.f32 %v245_v40, %v230_v39 }
 0x1d7   :  { %3009 = vtanh.f32 %v3320_v41  ;;  %v509_v40 = vrot.slane %v3320_v41, 7 }
 0x1e0   :  { %v3008_v46 = vpop.eup %3007 }
 0x1e1   :  { %258 = vrot.lane.b32.xlu0 %v3008_v46, %s3234_s0 }
 0x1e4   :  { %v3010_v49 = vpop.eup %3009 }
 0x1e5   :  { %256 = vrot.lane.b32.xlu1 %v3010_v49, %s3234_s0 }
 0x253   :  { %v259_v52 = vpop.permute.xlu0 %258 }
 0x254   :  { %v263_v53 = vmul.f32 %v3004_v30, %v259_v52 }
 0x256   :  { %v266_v55 = vrot.slane %v263_v53, 7 }
 0x257   :  { %v257_v54 = vpop.permute.xlu1 %256 }
 0x258   :  { %v262_v56 = vmul.f32 %v3006_v33, %v257_v54 }
 0x25a   :  { %v268_v57 = vsel %vm267_vm2, %v266_v55, %v262_v56 }
 0x25b   :  { %269 = vrot.lane.b32.xlu0 %v268_v57, %s3235_s22 }
 0x2cd   :  { %v270_v58 = vpop.permute.xlu0 %269 }
 0x2ce   :  { %v272_v59 = vsel %vm136_vm3, %v270_v58, 0.0  ;;  %2773 = vmatmul.mubr.msk.f32.vlgmr.msra.gmra.mxu1 %vm136_vm3, %v270_v58 }
 0x2cf   :  { %2762 = vmatmul.mubr.msk.f32.vlgmr.msra.gmra.mxu0 %vm277_vm4, %v272_v59  ;;  %2776 = vmatpush3.msra.mxu1 %v3323_v42 }
 0x2d0   :  { %2777 = vmatprep.subr.mxu1 %v3232_v0  ;;  %2795 = vmatpush3.msra.mxu0 %v3264_v1 }
 0x2d1   :  { %2778 = vmatpush3.msra.mxu1 %v3325_v43  ;;  %2796 = vmatprep.subr.mxu0 %v3232_v0 }
 0x2d2   :  { %2779 = vmatprep.subr.mxu1 %v3232_v0  ;;  %2797 = vmatpush3.msra.mxu0 %v3270_v4 }
 0x2d3   :  { %2780 = vmatpush3.msra.mxu1 %v3329_v44  ;;  %2798 = vmatprep.subr.mxu0 %v3232_v0 }
 0x2d4   :  { %2781 = vmatprep.subr.mxu1 %v3232_v0  ;;  %2799 = vmatpush3.msra.mxu0 %v3276_v6 }
 0x2d5   :  { %2782 = vmatpush3.msra.mxu1 %v3333_v45  ;;  %2800 = vmatprep.subr.mxu0 %v3232_v0 }
 0x2d6   :  { %2783 = vmatprep.subr.mxu1 %v3232_v0  ;;  %2801 = vmatpush3.msra.mxu0 %v3280_v7 }
 0x2d7   :  { %2784 = vmatpush3.msra.mxu1 %v3338_v47  ;;  %2802 = vmatprep.mubr.msk.f32.mxu0 %vm3233_vm0, %v3232_v0 }
 0x2d8   :  { %2785 = vmatprep.subr.mxu1 %v3232_v0  ;;  %2791 = vmatprep.mubr.msk.f32.mxu1 %vm3233_vm0, %v3232_v0 }
 0x2d9   :  { %2786 = vmatpush3.msra.mxu1 %v3342_v48  ;;  %2805 = vmatprep.subr.mxu0 %v3232_v0 }
 0x2da   :  { %2787 = vmatprep.subr.mxu1 %v3232_v0 }
 0x2db   :  { %2788 = vmatpush3.msra.mxu1 %v3347_v50 }
 0x2dc   :  { %2789 = vmatprep.subr.mxu1 %v3232_v0 }
 0x2dd   :  { %2790 = vmatpush3.msra.mxu1 %v3353_v51 }
 0x2de   :  { %2824 = vmatprep.subr.mxu1 %v3232_v0 }
 0x38e   :  { %v483_v61 = vpop.f32.mrf.mxu1 }
 0x38f   :  { %v488_v62 = vrot.slane %v483_v61, 7  ;;  %v492_v63 = vadd.f32 %v483_v61, %v3307_v14  ;;  %v347_v2 = vpop.f32.mrf.mxu0 }
 0x390   :  { %v2774_v5 = vpop.f32.mrf.mxu1  ;;  %v348_v13 = vadd.f32 %v347_v2, %v3392_v3 }
 0x391   :  { %v491_v11 = vadd.f32 %v488_v62, %v3309_v18  ;;  %3011 = vtanh.f32 %v492_v63  ;;  %v2763_v12 = vpop.f32.mrf.mxu0  ;;  %v2570_v19 = vmul.f32 -1.442695, %v492_v63 }
 0x392   :  { %v2567_v21 = vmul.f32 -1.442695, %v348_v13 }
 0x393   :  { %3013 = vtanh.f32 %v491_v11  ;;  %v2569_v20 = vmul.f32 -1.442695, %v491_v11 }
 0x394   :  { %3015 = vtanh.f32 %v348_v13 }
 0x395   :  { %3017 = vpow2.f32 %v2570_v19 }
 0x396   :  { %3019 = vpow2.f32 %v2569_v20 }
 0x397   :  { %3021 = vpow2.f32 %v2567_v21 }
 0x39e   :  { %v3012_v15 = vpop.eup %3011 }
 0x39f   :  { %519 = vrot.lane.b32.xlu0 %v3012_v15, %s3234_s0 }
 0x3a0   :  { %v3014_v16 = vpop.eup %3013 }
 0x3a1   :  { %517 = vrot.lane.b32.xlu1 %v3014_v16, %s3234_s0  ;;  %v3016_v17 = vpop.eup %3015 }
 0x3a2   :  { %v3018_v22 = vpop.eup %3017 }
 0x3a3   :  { %v3020_v23 = vpop.eup %3019  ;;  %v500_v24 = vadd.f32 1.0, %v3018_v22 }
 0x3a4   :  { %v499_v25 = vadd.f32 1.0, %v3020_v23  ;;  %v3022_v26 = vpop.eup %3021 }
 0x3a5   :  { %360 = vrot.lane.b32.xlu1 %v3016_v17, %s3234_s0  ;;  %3023 = vrcp.f32 %v500_v24  ;;  %v354_v27 = vadd.f32 1.0, %v3022_v26 }
 0x3a6   :  { %3025 = vrcp.f32 %v499_v25 }
 0x3a7   :  { %3027 = vrcp.f32 %v354_v27 }
 0x3b2   :  { %v3024_v28 = vpop.eup %3023 }
 0x3b3   :  { %v3026_v31 = vpop.eup %3025  ;;  %v514_v39 = vmul.f32 %v3024_v28, %v510_v37 }
 0x3b4   :  { %v3028_v34 = vpop.eup %3027  ;;  %v513_v52 = vmul.f32 %v3026_v31, %v509_v40 }
 0x3b5   :  { %v358_v55 = vmul.f32 0.0, %v3028_v34 }
 0x411   :  { %v520_v29 = vpop.permute.xlu0 %519 }
 0x412   :  { %v524_v30 = vmul.f32 %v3024_v28, %v520_v29 }
 0x413   :  { %v518_v32 = vpop.permute.xlu1 %517 }
 0x414   :  { %529 = vrot.lane.b32.xlu1 %v524_v30, %s3235_s22  ;;  %v523_v33 = vmul.f32 %v3026_v31, %v518_v32 }
 0x416   :  { %527 = vrot.lane.b32.xlu0 %v523_v33, %s3235_s22 }
 0x417   :  { %v361_v35 = vpop.permute.xlu1 %360 }
 0x418   :  { %v363_v36 = vmul.f32 %v3028_v34, %v361_v35 }
 0x41a   :  { %365 = vrot.lane.b32.xlu0 %v363_v36, %s3235_s22 }
 0x486   :  { %v530_v46 = vpop.permute.xlu1 %529 }
 0x487   :  { %v3404_v49 = vadd.f32 %v530_v46, %v514_v39 }
 0x488   :  { %v528_v53 = vpop.permute.xlu0 %527 }
 0x489   :  { %3029 = vtanh.f32 %v3404_v49  ;;  %v3407_v54 = vadd.f32 %v528_v53, %v513_v52 }
 0x48b   :  { %3031 = vtanh.f32 %v3407_v54 }
 0x48c   :  { %v366_v56 = vpop.permute.xlu0 %365 }
 0x48d   :  { %v3410_v57 = vadd.f32 %v366_v56, %v358_v55 }
 0x48f   :  { %3033 = vtanh.f32 %v3410_v57 }
 0x496   :  { %v3030_v38 = vpop.eup %3029 }
 0x497   :  { %541 = vrot.lane.b32.xlu0 %v3030_v38, %s3234_s0 }
 0x498   :  { %v3032_v41 = vpop.eup %3031 }
 0x499   :  { %539 = vrot.lane.b32.xlu1 %v3032_v41, %s3234_s0 }
 0x49c   :  { %v3034_v58 = vpop.eup %3033 }
 0x49d   :  { %371 = vrot.lane.b32.xlu1 %v3034_v58, %s3234_s0 }
 0x509   :  { %v542_v59 = vpop.permute.xlu0 %541 }
 0x50a   :  { %v546_v60 = vmul.f32 %v3024_v28, %v542_v59 }
 0x50b   :  { %v540_v62 = vpop.permute.xlu1 %539 }
 0x50c   :  { %v549_v61 = vrot.slane %v546_v60, 7  ;;  %v545_v63 = vmul.f32 %v3026_v31, %v540_v62 }
 0x50e   :  { %v697_v2 = vrot.slane %v545_v63, 1  ;;  %v551_v5 = vsel %vm550_vm5, %v549_v61, %v545_v63  ;;  %v796_v63 = vrot.slane %v3407_v54, 7 }
 0x50f   :  { %552 = vrot.lane.b32.xlu0 %v551_v5, %s3235_s22  ;;  %v372_v11 = vpop.permute.xlu1 %371 }
 0x510   :  { %v3417_v12 = vmul.f32 %v3028_v34, %v372_v11  ;;  %v698_v15 = vsel %vm267_vm2, %v546_v60, %v697_v2  ;;  %v797_v2 = vrot.slane %v3404_v49, 7 }
 0x512   :  { %v555_v13 = vrot.slane %v3417_v12, 7 }
 0x513   :  { %699 = vrot.lane.b32.xlu0 %v698_v15, %s3235_s22 }
 0x514   :  { %556 = vrot.lane.b32.xlu1 %v555_v13, %s3234_s0 }
 0x581   :  { %v553_v16 = vpop.permute.xlu0 %552 }
 0x585   :  { %v700_v17 = vpop.permute.xlu0 %699 }
 0x586   :  { %2803 = vmatmul.mubr.msk.f32.vlgmr.msra.gmra.mxu0 %vm136_vm3, %v700_v17  ;;  %v557_v19 = vpop.permute.xlu1 %556 }
 0x587   :  { %v559_v20 = vsel %vm136_vm3, %v553_v16, %v557_v19  ;;  %2806 = vmatpush3.msra.mxu0 %v3323_v42  ;;  %2821 = vmatprep.mubr.msk.f32.mxu0 %vm3233_vm0, %v3232_v0 }
 0x588   :  { %v561_v21 = vrot.slane %v559_v20, 1  ;;  %2807 = vmatprep.subr.mxu0 %v3232_v0 }
 0x589   :  { %2808 = vmatpush3.msra.mxu0 %v3325_v43 }
 0x58a   :  { %2792 = vmatmul.mubr.msk.f32.vlgmr.msra.gmra.mxu1 %vm277_vm4, %v561_v21  ;;  %2809 = vmatprep.subr.mxu0 %v3232_v0 }
 0x58b   :  { %2810 = vmatpush3.msra.mxu0 %v3329_v44  ;;  %2825 = vmatpush3.msra.mxu1 %v3264_v1 }
 0x58c   :  { %2811 = vmatprep.subr.mxu0 %v3232_v0  ;;  %2826 = vmatprep.subr.mxu1 %v3232_v0 }
 0x58d   :  { %2812 = vmatpush3.msra.mxu0 %v3333_v45  ;;  %2827 = vmatpush3.msra.mxu1 %v3270_v4 }
 0x58e   :  { %2813 = vmatprep.subr.mxu0 %v3232_v0  ;;  %2828 = vmatprep.subr.mxu1 %v3232_v0 }
 0x58f   :  { %2814 = vmatpush3.msra.mxu0 %v3338_v47  ;;  %2829 = vmatpush3.msra.mxu1 %v3276_v6 }
 0x590   :  { %2815 = vmatprep.subr.mxu0 %v3232_v0  ;;  %2830 = vmatprep.subr.mxu1 %v3232_v0 }
 0x591   :  { %2816 = vmatpush3.msra.mxu0 %v3342_v48  ;;  %2831 = vmatpush3.msra.mxu1 %v3280_v7 }
 0x592   :  { %2817 = vmatprep.subr.mxu0 %v3232_v0  ;;  %2832 = vmatprep.mubr.msk.f32.mxu1 %vm3233_vm0, %v3232_v0 }
 0x593   :  { %2818 = vmatpush3.msra.mxu0 %v3347_v50  ;;  %2835 = vmatprep.subr.mxu1 %v3232_v0 }
 0x594   :  { %2819 = vmatprep.subr.mxu0 %v3232_v0 }
 0x595   :  { %2820 = vmatpush3.msra.mxu0 %v3353_v51 }
 0x596   :  { %2854 = vmatprep.subr.mxu0 %v3232_v0 }
 0x646   :  { %v769_v22 = vpop.f32.mrf.mxu0 }
 0x647   :  { %v774_v23 = vrot.slane %v769_v22, 6  ;;  %v775_v24 = vrot.slane %v769_v22, 7 }
 0x648   :  { %v2804_v25 = vpop.f32.mrf.mxu0 }
 0x649   :  { %v778_v26 = vadd.f32 %v774_v23, %v3309_v18  ;;  %v779_v27 = vadd.f32 %v775_v24, %v3307_v14 }
 0x64a   :  { %v630_v28 = vpop.f32.mrf.mxu1 }
 0x64b   :  { %3035 = vtanh.f32 %v778_v26  ;;  %v631_v29 = vadd.f32 %v630_v28, %v3392_v3  ;;  %v2574_v34 = vmul.f32 -1.442695, %v778_v26  ;;  %v2575_v35 = vmul.f32 -1.442695, %v779_v27 }
 0x64c   :  { %3037 = vtanh.f32 %v779_v27  ;;  %v2793_v30 = vpop.f32.mrf.mxu1 }
 0x64d   :  { %3039 = vtanh.f32 %v631_v29  ;;  %v2572_v36 = vmul.f32 -1.442695, %v631_v29 }
 0x64e   :  { %3041 = vpow2.f32 %v2574_v34 }
 0x64f   :  { %3043 = vpow2.f32 %v2575_v35 }
 0x650   :  { %3045 = vpow2.f32 %v2572_v36 }
 0x658   :  { %v3036_v31 = vpop.eup %3035 }
 0x659   :  { %v3038_v32 = vpop.eup %3037  ;;  %804 = vrot.lane.b32.xlu1 %v3036_v31, %s3234_s0 }
 0x65a   :  { %806 = vrot.lane.b32.xlu0 %v3038_v32, %s3234_s0  ;;  %v3040_v33 = vpop.eup %3039 }
 0x65b   :  { %v3042_v37 = vpop.eup %3041 }
 0x65c   :  { %v3044_v39 = vpop.eup %3043  ;;  %v786_v40 = vadd.f32 1.0, %v3042_v37 }
 0x65d   :  { %643 = vrot.lane.b32.xlu1 %v3040_v33, %s3234_s0  ;;  %v787_v46 = vadd.f32 1.0, %v3044_v39  ;;  %v3046_v52 = vpop.eup %3045 }
 0x65e   :  { %3047 = vrcp.f32 %v786_v40  ;;  %v637_v53 = vadd.f32 1.0, %v3046_v52 }
 0x65f   :  { %3049 = vrcp.f32 %v787_v46 }
 0x660   :  { %3051 = vrcp.f32 %v637_v53 }
 0x66b   :  { %v3048_v55 = vpop.eup %3047 }
 0x66c   :  { %v3050_v38 = vpop.eup %3049  ;;  %v800_v5 = vmul.f32 %v3048_v55, %v796_v63 }
 0x66d   :  { %v3052_v60 = vpop.eup %3051  ;;  %v801_v11 = vmul.f32 %v3050_v38, %v797_v2 }
 0x66e   :  { %v641_v19 = vmul.f32 %v3052_v60, %v3410_v57 }
 0x6cb   :  { %v805_v56 = vpop.permute.xlu1 %804 }
 0x6cc   :  { %v807_v41 = vpop.permute.xlu0 %806  ;;  %v810_v58 = vmul.f32 %v3048_v55, %v805_v56 }
 0x6cd   :  { %v811_v59 = vmul.f32 %v3050_v38, %v807_v41 }
 0x6ce   :  { %814 = vrot.lane.b32.xlu0 %v810_v58, %s3235_s22 }
 0x6cf   :  { %816 = vrot.lane.b32.xlu1 %v811_v59, %s3235_s22  ;;  %v644_v61 = vpop.permute.xlu1 %643 }
 0x6d0   :  { %v646_v62 = vmul.f32 %v3052_v60, %v644_v61 }
 0x6d2   :  { %648 = vrot.lane.b32.xlu0 %v646_v62, %s3235_s22 }
 0x740   :  { %v815_v13 = vpop.permute.xlu0 %814 }
 0x741   :  { %v817_v15 = vpop.permute.xlu1 %816  ;;  %v3465_v16 = vadd.f32 %v815_v13, %v800_v5 }
 0x742   :  { %v3467_v17 = vadd.f32 %v817_v15, %v801_v11 }
 0x743   :  { %3053 = vtanh.f32 %v3465_v16 }
 0x744   :  { %3055 = vtanh.f32 %v3467_v17  ;;  %v649_v20 = vpop.permute.xlu0 %648 }
 0x745   :  { %v3472_v21 = vadd.f32 %v649_v20, %v641_v19 }
 0x747   :  { %3057 = vtanh.f32 %v3472_v21 }
 0x750   :  { %v3054_v49 = vpop.eup %3053 }
 0x751   :  { %v3056_v54 = vpop.eup %3055  ;;  %826 = vrot.lane.b32.xlu1 %v3054_v49, %s3234_s0 }
 0x752   :  { %828 = vrot.lane.b32.xlu0 %v3056_v54, %s3234_s0 }
 0x754   :  { %v3058_v22 = vpop.eup %3057 }
 0x755   :  { %654 = vrot.lane.b32.xlu1 %v3058_v22, %s3234_s0 }
 0x7c3   :  { %v827_v23 = vpop.permute.xlu1 %826 }
 0x7c4   :  { %v829_v24 = vpop.permute.xlu0 %828  ;;  %v832_v26 = vmul.f32 %v3048_v55, %v827_v23 }
 0x7c5   :  { %v833_v25 = vmul.f32 %v3050_v38, %v829_v24 }
 0x7c6   :  { %v984_v29 = vrot.slane %v832_v26, 2 }
 0x7c7   :  { %v836_v57 = vrot.slane %v833_v25, 7  ;;  %v655_v27 = vpop.permute.xlu1 %654  ;;  %v985_v28 = vrot.slane %v833_v25, 1 }
 0x7c8   :  { %v3478_v30 = vmul.f32 %v3052_v60, %v655_v27 }
 0x7c9   :  { %v838_v31 = vsel %vm837_vm6, %v836_v57, %v832_v26  ;;  %v986_v33 = vsel %vm267_vm2, %v985_v28, %v984_v29  ;;  %v1084_v28 = vrot.slane %v3465_v16, 7  ;;  %v1085_v29 = vrot.slane %v3467_v17, 7 }
 0x7ca   :  { %839 = vrot.lane.b32.xlu0 %v838_v31, %s3235_s22  ;;  %v842_v32 = vrot.slane %v3478_v30, 6 }
 0x7cc   :  { %843 = vrot.lane.b32.xlu1 %v842_v32, %s3234_s0 }
 0x7ce   :  { %987 = vrot.lane.b32.xlu0 %v986_v33, %s3235_s22 }
 0x83c   :  { %v840_v34 = vpop.permute.xlu0 %839 }
 0x83e   :  { %v844_v35 = vpop.permute.xlu1 %843 }
 0x83f   :  { %v846_v36 = vsel %vm136_vm3, %v840_v34, %v844_v35 }
 0x840   :  { %v988_v37 = vpop.permute.xlu0 %987  ;;  %v848_v39 = vrot.slane %v846_v36, 2 }
 0x841   :  { %2833 = vmatmul.mubr.msk.f32.vlgmr.msra.gmra.mxu1 %vm136_vm3, %v988_v37 }
 0x842   :  { %2836 = vmatpush3.msra.mxu1 %v3323_v42  ;;  %2851 = vmatprep.mubr.msk.f32.mxu1 %vm3233_vm0, %v3232_v0 }
 0x843   :  { %2822 = vmatmul.mubr.msk.f32.vlgmr.msra.gmra.mxu0 %vm277_vm4, %v848_v39  ;;  %2837 = vmatprep.subr.mxu1 %v3232_v0 }
 0x844   :  { %2838 = vmatpush3.msra.mxu1 %v3325_v43  ;;  %2855 = vmatpush3.msra.mxu0 %v3264_v1 }
 0x845   :  { %2839 = vmatprep.subr.mxu1 %v3232_v0  ;;  %2856 = vmatprep.subr.mxu0 %v3232_v0 }
 0x846   :  { %2840 = vmatpush3.msra.mxu1 %v3329_v44  ;;  %2857 = vmatpush3.msra.mxu0 %v3270_v4 }
 0x847   :  { %2841 = vmatprep.subr.mxu1 %v3232_v0  ;;  %2858 = vmatprep.subr.mxu0 %v3232_v0 }
 0x848   :  { %2842 = vmatpush3.msra.mxu1 %v3333_v45  ;;  %2859 = vmatpush3.msra.mxu0 %v3276_v6 }
 0x849   :  { %2843 = vmatprep.subr.mxu1 %v3232_v0  ;;  %2860 = vmatprep.subr.mxu0 %v3232_v0 }
 0x84a   :  { %2844 = vmatpush3.msra.mxu1 %v3338_v47  ;;  %2861 = vmatpush3.msra.mxu0 %v3280_v7 }
 0x84b   :  { %2845 = vmatprep.subr.mxu1 %v3232_v0  ;;  %2862 = vmatprep.mubr.msk.f32.mxu0 %vm3233_vm0, %v3232_v0 }
 0x84c   :  { %2846 = vmatpush3.msra.mxu1 %v3342_v48  ;;  %2865 = vmatprep.subr.mxu0 %v3232_v0 }
 0x84d   :  { %2847 = vmatprep.subr.mxu1 %v3232_v0 }
 0x84e   :  { %2848 = vmatpush3.msra.mxu1 %v3347_v50 }
 0x84f   :  { %2849 = vmatprep.subr.mxu1 %v3232_v0 }
 0x850   :  { %2850 = vmatpush3.msra.mxu1 %v3353_v51 }
 0x851   :  { %2884 = vmatprep.subr.mxu1 %v3232_v0 }
 0x901   :  { %v1057_v40 = vpop.f32.mrf.mxu1 }
 0x902   :  { %v1062_v46 = vrot.slane %v1057_v40, 5  ;;  %v1063_v52 = vrot.slane %v1057_v40, 6 }
 0x903   :  { %v917_v53 = vpop.f32.mrf.mxu0  ;;  %v2834_v55 = vpop.f32.mrf.mxu1 }
 0x904   :  { %v1066_v56 = vadd.f32 %v1062_v46, %v3309_v18  ;;  %v1067_v38 = vadd.f32 %v1063_v52, %v3307_v14  ;;  %v918_v58 = vadd.f32 %v917_v53, %v3392_v3 }
 0x905   :  { %v2823_v41 = vpop.f32.mrf.mxu0 }
 0x906   :  { %3059 = vtanh.f32 %v1066_v56  ;;  %v2579_v62 = vmul.f32 -1.442695, %v1066_v56  ;;  %v2580_v63 = vmul.f32 -1.442695, %v1067_v38  ;;  %v2577_v2 = vmul.f32 -1.442695, %v918_v58 }
 0x907   :  { %3061 = vtanh.f32 %v1067_v38 }
 0x908   :  { %3063 = vtanh.f32 %v918_v58 }
 0x909   :  { %3065 = vpow2.f32 %v2579_v62 }
 0x90a   :  { %3067 = vpow2.f32 %v2580_v63 }
 0x90b   :  { %3069 = vpow2.f32 %v2577_v2 }
 0x913   :  { %v3060_v59 = vpop.eup %3059 }
 0x914   :  { %v3062_v60 = vpop.eup %3061  ;;  %1092 = vrot.lane.b32.xlu1 %v3060_v59, %s3234_s0 }
 0x915   :  { %1094 = vrot.lane.b32.xlu0 %v3062_v60, %s3234_s0  ;;  %v3064_v61 = vpop.eup %3063 }
 0x916   :  { %v3066_v5 = vpop.eup %3065 }
 0x917   :  { %v3068_v11 = vpop.eup %3067  ;;  %v1074_v13 = vadd.f32 1.0, %v3066_v5 }
 0x918   :  { %930 = vrot.lane.b32.xlu1 %v3064_v61, %s3234_s0  ;;  %v1075_v15 = vadd.f32 1.0, %v3068_v11  ;;  %v3070_v19 = vpop.eup %3069 }
 0x919   :  { %3071 = vrcp.f32 %v1074_v13  ;;  %v924_v20 = vadd.f32 1.0, %v3070_v19 }
 0x91a   :  { %3073 = vrcp.f32 %v1075_v15 }
 0x91b   :  { %3075 = vrcp.f32 %v924_v20 }
 0x926   :  { %v3072_v49 = vpop.eup %3071 }
 0x927   :  { %v3074_v22 = vpop.eup %3073  ;;  %v1088_v31 = vmul.f32 %v3072_v49, %v1084_v28 }
 0x928   :  { %v3076_v26 = vpop.eup %3075  ;;  %v1089_v33 = vmul.f32 %v3074_v22, %v1085_v29 }
 0x929   :  { %v928_v37 = vmul.f32 %v3076_v26, %v3472_v21 }
 0x986   :  { %v1093_v54 = vpop.permute.xlu1 %1092 }
 0x987   :  { %v1095_v23 = vpop.permute.xlu0 %1094  ;;  %v1098_v24 = vmul.f32 %v3072_v49, %v1093_v54 }
 0x988   :  { %v1099_v25 = vmul.f32 %v3074_v22, %v1095_v23 }
 0x989   :  { %1102 = vrot.lane.b32.xlu0 %v1098_v24, %s3235_s22 }
 0x98a   :  { %1104 = vrot.lane.b32.xlu1 %v1099_v25, %s3235_s22  ;;  %v931_v57 = vpop.permute.xlu1 %930 }
 0x98b   :  { %v933_v27 = vmul.f32 %v3076_v26, %v931_v57 }
 0x98d   :  { %935 = vrot.lane.b32.xlu0 %v933_v27, %s3235_s22 }
 0x9fb   :  { %v1103_v32 = vpop.permute.xlu0 %1102 }
 0x9fc   :  { %v3527_v34 = vadd.f32 %v1103_v32, %v1088_v31  ;;  %v1105_v35 = vpop.permute.xlu1 %1104 }
 0x9fd   :  { %v3529_v36 = vadd.f32 %v1105_v35, %v1089_v33 }
 0x9fe   :  { %3077 = vtanh.f32 %v3527_v34 }
 0x9ff   :  { %3079 = vtanh.f32 %v3529_v36  ;;  %v936_v39 = vpop.permute.xlu0 %935 }
 0xa00   :  { %v3534_v40 = vadd.f32 %v936_v39, %v928_v37 }
 0xa02   :  { %3081 = vtanh.f32 %v3534_v40 }
 0xa0b   :  { %v3078_v16 = vpop.eup %3077 }
 0xa0c   :  { %v3080_v17 = vpop.eup %3079  ;;  %1114 = vrot.lane.b32.xlu1 %v3078_v16, %s3234_s0 }
 0xa0d   :  { %1116 = vrot.lane.b32.xlu0 %v3080_v17, %s3234_s0 }
 0xa0f   :  { %v3082_v46 = vpop.eup %3081 }
 0xa10   :  { %941 = vrot.lane.b32.xlu1 %v3082_v46, %s3234_s0 }
 0xa7e   :  { %v1115_v52 = vpop.permute.xlu1 %1114 }
 0xa7f   :  { %v1117_v53 = vpop.permute.xlu0 %1116  ;;  %v1120_v55 = vmul.f32 %v3072_v49, %v1115_v52 }
 0xa80   :  { %v1121_v56 = vmul.f32 %v3074_v22, %v1117_v53 }
 0xa81   :  { %v1272_v41 = vrot.slane %v1120_v55, 3 }
 0xa82   :  { %v1124_v21 = vrot.slane %v1121_v56, 7  ;;  %v942_v38 = vpop.permute.xlu1 %941  ;;  %v1273_v58 = vrot.slane %v1121_v56, 2  ;;  %v1372_v56 = vrot.slane %v3527_v34, 7 }
 0xa83   :  { %v3540_v59 = vmul.f32 %v3076_v26, %v942_v38 }
 0xa84   :  { %v1126_v60 = vsel %vm1125_vm7, %v1124_v21, %v1120_v55  ;;  %v1274_v62 = vsel %vm267_vm2, %v1273_v58, %v1272_v41  ;;  %v1373_v21 = vrot.slane %v3529_v36, 7 }
 0xa85   :  { %1127 = vrot.lane.b32.xlu0 %v1126_v60, %s3235_s22  ;;  %v1130_v61 = vrot.slane %v3540_v59, 5 }
 0xa87   :  { %1131 = vrot.lane.b32.xlu1 %v1130_v61, %s3234_s0 }
 0xa89   :  { %1275 = vrot.lane.b32.xlu0 %v1274_v62, %s3235_s22 }
 0xaf7   :  { %v1128_v63 = vpop.permute.xlu0 %1127 }
 0xaf9   :  { %v1132_v2 = vpop.permute.xlu1 %1131 }
 0xafa   :  { %v1134_v5 = vsel %vm136_vm3, %v1128_v63, %v1132_v2 }
 0xafb   :  { %v1276_v11 = vpop.permute.xlu0 %1275  ;;  %v1136_v13 = vrot.slane %v1134_v5, 3 }
 0xafc   :  { %2863 = vmatmul.mubr.msk.f32.vlgmr.msra.gmra.mxu0 %vm136_vm3, %v1276_v11 }
 0xafd   :  { %2866 = vmatpush3.msra.mxu0 %v3323_v42  ;;  %2881 = vmatprep.mubr.msk.f32.mxu0 %vm3233_vm0, %v3232_v0 }
 0xafe   :  { %2852 = vmatmul.mubr.msk.f32.vlgmr.msra.gmra.mxu1 %vm277_vm4, %v1136_v13  ;;  %2867 = vmatprep.subr.mxu0 %v3232_v0 }
 0xaff   :  { %2868 = vmatpush3.msra.mxu0 %v3325_v43  ;;  %2885 = vmatpush3.msra.mxu1 %v3264_v1 }
 0xb00   :  { %2869 = vmatprep.subr.mxu0 %v3232_v0  ;;  %2886 = vmatprep.subr.mxu1 %v3232_v0 }
 0xb01   :  { %2870 = vmatpush3.msra.mxu0 %v3329_v44  ;;  %2887 = vmatpush3.msra.mxu1 %v3270_v4 }
 0xb02   :  { %2871 = vmatprep.subr.mxu0 %v3232_v0  ;;  %2888 = vmatprep.subr.mxu1 %v3232_v0 }
 0xb03   :  { %2872 = vmatpush3.msra.mxu0 %v3333_v45  ;;  %2889 = vmatpush3.msra.mxu1 %v3276_v6 }
 0xb04   :  { %2873 = vmatprep.subr.mxu0 %v3232_v0  ;;  %2890 = vmatprep.subr.mxu1 %v3232_v0 }
 0xb05   :  { %2874 = vmatpush3.msra.mxu0 %v3338_v47  ;;  %2891 = vmatpush3.msra.mxu1 %v3280_v7 }
 0xb06   :  { %2875 = vmatprep.subr.mxu0 %v3232_v0  ;;  %2892 = vmatprep.mubr.msk.f32.mxu1 %vm3233_vm0, %v3232_v0 }
 0xb07   :  { %2876 = vmatpush3.msra.mxu0 %v3342_v48  ;;  %2895 = vmatprep.subr.mxu1 %v3232_v0 }
 0xb08   :  { %2877 = vmatprep.subr.mxu0 %v3232_v0 }
 0xb09   :  { %2878 = vmatpush3.msra.mxu0 %v3347_v50 }
 0xb0a   :  { %2879 = vmatprep.subr.mxu0 %v3232_v0 }
 0xb0b   :  { %2880 = vmatpush3.msra.mxu0 %v3353_v51 }
 0xb0c   :  { %2914 = vmatprep.subr.mxu0 %v3232_v0 }
 0xbbc   :  { %v1345_v1 = vpop.f32.mrf.mxu0 }
 0xbbd   :  { %v1350_v4 = vrot.slane %v1345_v1, 4  ;;  %v1351_v6 = vrot.slane %v1345_v1, 5 }
 0xbbe   :  { %v1205_v7 = vpop.f32.mrf.mxu1  ;;  %v2864_v15 = vpop.f32.mrf.mxu0 }
 0xbbf   :  { %v1354_v19 = vadd.f32 %v1350_v4, %v3309_v18  ;;  %v1355_v20 = vadd.f32 %v1351_v6, %v3307_v14  ;;  %v1206_v54 = vadd.f32 %v1205_v7, %v3392_v3 }
 0xbc0   :  { %v2853_v49 = vpop.f32.mrf.mxu1 }
 0xbc1   :  { %3083 = vtanh.f32 %v1354_v19  ;;  %v2584_v25 = vmul.f32 -1.442695, %v1354_v19  ;;  %v2585_v26 = vmul.f32 -1.442695, %v1355_v20  ;;  %v2582_v57 = vmul.f32 -1.442695, %v1206_v54 }
 0xbc2   :  { %3085 = vtanh.f32 %v1355_v20 }
 0xbc3   :  { %3087 = vtanh.f32 %v1206_v54 }
 0xbc4   :  { %3089 = vpow2.f32 %v2584_v25 }
 0xbc5   :  { %3091 = vpow2.f32 %v2585_v26 }
 0xbc6   :  { %3093 = vpow2.f32 %v2582_v57 }
 0xbce   :  { %v3084_v22 = vpop.eup %3083 }
 0xbcf   :  { %v3086_v23 = vpop.eup %3085  ;;  %1380 = vrot.lane.b32.xlu1 %v3084_v22, %s3234_s0 }
 0xbd0   :  { %1382 = vrot.lane.b32.xlu0 %v3086_v23, %s3234_s0  ;;  %v3088_v24 = vpop.eup %3087 }
 0xbd1   :  { %v3090_v27 = vpop.eup %3089 }
 0xbd2   :  { %v3092_v28 = vpop.eup %3091  ;;  %v1362_v29 = vadd.f32 1.0, %v3090_v27  ;;  %v3617_v27 = vld [vmem:[#allocation3 + $0x28] sm:$0xff] }
 0xbd3   :  { %1218 = vrot.lane.b32.xlu1 %v3088_v24, %s3234_s0  ;;  %v1363_v31 = vadd.f32 1.0, %v3092_v28  ;;  %v3094_v32 = vpop.eup %3093 }
 0xbd4   :  { %3095 = vrcp.f32 %v1362_v29  ;;  %v1212_v33 = vadd.f32 1.0, %v3094_v32 }
 0xbd5   :  { %3097 = vrcp.f32 %v1363_v31 }
 0xbd6   :  { %3099 = vrcp.f32 %v1212_v33 }
 0xbe1   :  { %v3096_v35 = vpop.eup %3095 }
 0xbe2   :  { %v3098_v39 = vpop.eup %3097  ;;  %v1376_v38 = vmul.f32 %v3096_v35, %v1372_v56 }
 0xbe3   :  { %v3100_v52 = vpop.eup %3099  ;;  %v1377_v41 = vmul.f32 %v3098_v39, %v1373_v21 }
 0xbe4   :  { %v1216_v63 = vmul.f32 %v3100_v52, %v3534_v40 }
 0xc41   :  { %v1381_v37 = vpop.permute.xlu1 %1380 }
 0xc42   :  { %v1383_v16 = vpop.permute.xlu0 %1382  ;;  %v1386_v17 = vmul.f32 %v3096_v35, %v1381_v37 }
 0xc43   :  { %v1387_v46 = vmul.f32 %v3098_v39, %v1383_v16 }
 0xc44   :  { %1390 = vrot.lane.b32.xlu0 %v1386_v17, %s3235_s22 }
 0xc45   :  { %1392 = vrot.lane.b32.xlu1 %v1387_v46, %s3235_s22  ;;  %v1219_v53 = vpop.permute.xlu1 %1218 }
 0xc46   :  { %v1221_v55 = vmul.f32 %v3100_v52, %v1219_v53 }
 0xc48   :  { %1223 = vrot.lane.b32.xlu0 %v1221_v55, %s3235_s22 }
 0xcb6   :  { %v1391_v58 = vpop.permute.xlu0 %1390 }
 0xcb7   :  { %v1393_v60 = vpop.permute.xlu1 %1392  ;;  %v3589_v61 = vadd.f32 %v1391_v58, %v1376_v38 }
 0xcb8   :  { %v3591_v62 = vadd.f32 %v1393_v60, %v1377_v41 }
 0xcb9   :  { %3101 = vtanh.f32 %v3589_v61 }
 0xcba   :  { %3103 = vtanh.f32 %v3591_v62  ;;  %v1224_v2 = vpop.permute.xlu0 %1223 }
 0xcbb   :  { %v3596_v5 = vadd.f32 %v1224_v2, %v1216_v63 }
 0xcbd   :  { %3105 = vtanh.f32 %v3596_v5 }
 0xcc6   :  { %v3102_v34 = vpop.eup %3101 }
 0xcc7   :  { %v3104_v36 = vpop.eup %3103  ;;  %1402 = vrot.lane.b32.xlu1 %v3102_v34, %s3234_s0 }
 0xcc8   :  { %1404 = vrot.lane.b32.xlu0 %v3104_v36, %s3234_s0 }
 0xcca   :  { %v3106_v11 = vpop.eup %3105 }
 0xccb   :  { %1229 = vrot.lane.b32.xlu1 %v3106_v11, %s3234_s0 }
 0xd39   :  { %v1403_v13 = vpop.permute.xlu1 %1402 }
 0xd3a   :  { %v1405_v1 = vpop.permute.xlu0 %1404  ;;  %v1408_v6 = vmul.f32 %v3096_v35, %v1403_v13  ;;  %v1660_v13 = vrot.slane %v3589_v61, 7 }
 0xd3b   :  { %v1409_v4 = vmul.f32 %v3098_v39, %v1405_v1  ;;  %v1661_v1 = vrot.slane %v3591_v62, 7 }
 0xd3c   :  { %v1560_v19 = vrot.slane %v1408_v6, 4 }
 0xd3d   :  { %v1412_v40 = vrot.slane %v1409_v4, 7  ;;  %v1230_v7 = vpop.permute.xlu1 %1229  ;;  %v1561_v15 = vrot.slane %v1409_v4, 3 }
 0xd3e   :  { %v3602_v20 = vmul.f32 %v3100_v52, %v1230_v7 }
 0xd3f   :  { %v1414_v49 = vsel %vm1413_vm8, %v1412_v40, %v1408_v6  ;;  %v1562_v22 = vsel %vm267_vm2, %v1561_v15, %v1560_v19 }
 0xd40   :  { %1415 = vrot.lane.b32.xlu0 %v1414_v49, %s3235_s22  ;;  %v1418_v54 = vrot.slane %v3602_v20, 4 }
 0xd42   :  { %1419 = vrot.lane.b32.xlu1 %v1418_v54, %s3234_s0 }
 0xd44   :  { %1563 = vrot.lane.b32.xlu0 %v1562_v22, %s3235_s22 }
 0xdb2   :  { %v1416_v23 = vpop.permute.xlu0 %1415 }
 0xdb4   :  { %v1420_v24 = vpop.permute.xlu1 %1419 }
 0xdb5   :  { %v1422_v25 = vsel %vm136_vm3, %v1416_v23, %v1420_v24 }
 0xdb6   :  { %v1564_v26 = vpop.permute.xlu0 %1563  ;;  %v1424_v57 = vrot.slane %v1422_v25, 4 }
 0xdb7   :  { %2893 = vmatmul.mubr.msk.f32.vlgmr.msra.gmra.mxu1 %vm136_vm3, %v1564_v26 }
 0xdb8   :  { %2896 = vmatpush3.msra.mxu1 %v3323_v42  ;;  %2911 = vmatprep.mubr.msk.f32.mxu1 %vm3233_vm0, %v3232_v0  ;;  %v3623_v42 = vld [vmem:[#allocation3 + $0x20] sm:$0xff] }
 0xdb9   :  { %2882 = vmatmul.mubr.msk.f32.vlgmr.msra.gmra.mxu0 %vm277_vm4, %v1424_v57  ;;  %2897 = vmatprep.subr.mxu1 %v3232_v0 }
 0xdba   :  { %2898 = vmatpush3.msra.mxu1 %v3325_v43  ;;  %2915 = vmatpush3.msra.mxu0 %v3617_v27  ;;  %v3629_v43 = vld [vmem:[#allocation3 + $0x18] sm:$0xff] }
 0xdbb   :  { %2899 = vmatprep.subr.mxu1 %v3232_v0  ;;  %2916 = vmatprep.subr.mxu0 %v3232_v0 }
 0xdbc   :  { %2900 = vmatpush3.msra.mxu1 %v3329_v44  ;;  %2917 = vmatpush3.msra.mxu0 %v3623_v42  ;;  %v3635_v44 = vld [vmem:[#allocation3 + $0x10] sm:$0xff] }
 0xdbd   :  { %2901 = vmatprep.subr.mxu1 %v3232_v0  ;;  %2918 = vmatprep.subr.mxu0 %v3232_v0 }
 0xdbe   :  { %2902 = vmatpush3.msra.mxu1 %v3333_v45  ;;  %2919 = vmatpush3.msra.mxu0 %v3629_v43 }
 0xdbf   :  { %2903 = vmatprep.subr.mxu1 %v3232_v0  ;;  %2920 = vmatprep.subr.mxu0 %v3232_v0 }
 0xdc0   :  { %2904 = vmatpush3.msra.mxu1 %v3338_v47  ;;  %2921 = vmatpush3.msra.mxu0 %v3635_v44 }
 0xdc1   :  { %2905 = vmatprep.subr.mxu1 %v3232_v0  ;;  %2922 = vmatprep.mubr.msk.f32.mxu0 %vm3233_vm0, %v3232_v0 }
 0xdc2   :  { %2906 = vmatpush3.msra.mxu1 %v3342_v48  ;;  %2925 = vmatprep.subr.mxu0 %v3232_v0 }
 0xdc3   :  { %2907 = vmatprep.subr.mxu1 %v3232_v0 }
 0xdc4   :  { %2908 = vmatpush3.msra.mxu1 %v3347_v50 }
 0xdc5   :  { %2909 = vmatprep.subr.mxu1 %v3232_v0 }
 0xdc6   :  { %2910 = vmatpush3.msra.mxu1 %v3353_v51 }
 0xdc7   :  { %2944 = vmatprep.subr.mxu1 %v3232_v0 }
 0xe77   :  { %v1633_v45 = vpop.f32.mrf.mxu1 }
 0xe78   :  { %v1638_v47 = vrot.slane %v1633_v45, 3  ;;  %v1639_v28 = vrot.slane %v1633_v45, 4 }
 0xe79   :  { %v1493_v29 = vpop.f32.mrf.mxu0  ;;  %v2894_v31 = vpop.f32.mrf.mxu1 }
 0xe7a   :  { %v1642_v32 = vadd.f32 %v1638_v47, %v3309_v18  ;;  %v1643_v48 = vadd.f32 %v1639_v28, %v3307_v14  ;;  %v1494_v50 = vadd.f32 %v1493_v29, %v3392_v3 }
 0xe7b   :  { %v2883_v33 = vpop.f32.mrf.mxu0 }
 0xe7c   :  { %3107 = vtanh.f32 %v1642_v32  ;;  %v2589_v39 = vmul.f32 -1.442695, %v1642_v32  ;;  %v2590_v16 = vmul.f32 -1.442695, %v1643_v48  ;;  %v2587_v17 = vmul.f32 -1.442695, %v1494_v50 }
 0xe7d   :  { %3109 = vtanh.f32 %v1643_v48 }
 0xe7e   :  { %3111 = vtanh.f32 %v1494_v50 }
 0xe7f   :  { %3113 = vpow2.f32 %v2589_v39  ;;  %v3681_v39 = vld [vmem:[#allocation3 + $0x68] sm:$0xff] }
 0xe80   :  { %3115 = vpow2.f32 %v2590_v16  ;;  %v3688_v16 = vld [vmem:[#allocation3 + $0x60] sm:$0xff] }
 0xe81   :  { %3117 = vpow2.f32 %v2587_v17  ;;  %v3694_v17 = vld [vmem:[#allocation3 + $0x58] sm:$0xff] }
 0xe89   :  { %v3108_v35 = vpop.eup %3107 }
 0xe8a   :  { %v3110_v37 = vpop.eup %3109  ;;  %1668 = vrot.lane.b32.xlu1 %v3108_v35, %s3234_s0 }
 0xe8b   :  { %1670 = vrot.lane.b32.xlu0 %v3110_v37, %s3234_s0  ;;  %v3112_v51 = vpop.eup %3111 }
 0xe8c   :  { %v3114_v46 = vpop.eup %3113 }
 0xe8d   :  { %v3116_v52 = vpop.eup %3115  ;;  %v1650_v53 = vadd.f32 1.0, %v3114_v46  ;;  %v3700_v46 = vld [vmem:[#allocation3 + $0x50] sm:$0xff] }
 0xe8e   :  { %1506 = vrot.lane.b32.xlu1 %v3112_v51, %s3234_s0  ;;  %v1651_v55 = vadd.f32 1.0, %v3116_v52  ;;  %v3118_v56 = vpop.eup %3117 }
 0xe8f   :  { %3119 = vrcp.f32 %v1650_v53  ;;  %v1500_v21 = vadd.f32 1.0, %v3118_v56 }
 0xe90   :  { %3121 = vrcp.f32 %v1651_v55 }
 0xe91   :  { %3123 = vrcp.f32 %v1500_v21 }
 0xe9c   :  { %v3120_v38 = vpop.eup %3119 }
 0xe9d   :  { %v3122_v58 = vpop.eup %3121  ;;  %v1664_v4 = vmul.f32 %v3120_v38, %v1660_v13 }
 0xe9e   :  { %v3124_v34 = vpop.eup %3123  ;;  %v1665_v40 = vmul.f32 %v3122_v58, %v1661_v1 }
 0xe9f   :  { %v1504_v49 = vmul.f32 %v3124_v34, %v3596_v5 }
 0xefc   :  { %v1669_v41 = vpop.permute.xlu1 %1668 }
 0xefd   :  { %v1671_v60 = vpop.permute.xlu0 %1670  ;;  %v1674_v63 = vmul.f32 %v3120_v38, %v1669_v41 }
 0xefe   :  { %v1675_v2 = vmul.f32 %v3122_v58, %v1671_v60 }
 0xeff   :  { %1678 = vrot.lane.b32.xlu0 %v1674_v63, %s3235_s22 }
 0xf00   :  { %1680 = vrot.lane.b32.xlu1 %v1675_v2, %s3235_s22  ;;  %v1507_v36 = vpop.permute.xlu1 %1506 }
 0xf01   :  { %v1509_v11 = vmul.f32 %v3124_v34, %v1507_v36 }
 0xf03   :  { %1511 = vrot.lane.b32.xlu0 %v1509_v11, %s3235_s22 }
 0xf71   :  { %v1679_v6 = vpop.permute.xlu0 %1678 }
 0xf72   :  { %v3659_v7 = vadd.f32 %v1679_v6, %v1664_v4  ;;  %v1681_v15 = vpop.permute.xlu1 %1680 }
 0xf73   :  { %v3661_v19 = vadd.f32 %v1681_v15, %v1665_v40 }
 0xf74   :  { %3125 = vtanh.f32 %v3659_v7 }
 0xf75   :  { %3127 = vtanh.f32 %v3661_v19  ;;  %v1512_v54 = vpop.permute.xlu0 %1511 }
 0xf76   :  { %v3666_v22 = vadd.f32 %v1512_v54, %v1504_v49 }
 0xf78   :  { %3129 = vtanh.f32 %v3666_v22 }
 0xf81   :  { %v3126_v61 = vpop.eup %3125 }
 0xf82   :  { %v3128_v62 = vpop.eup %3127  ;;  %1690 = vrot.lane.b32.xlu1 %v3126_v61, %s3234_s0 }
 0xf83   :  { %1692 = vrot.lane.b32.xlu0 %v3128_v62, %s3234_s0 }
 0xf85   :  { %v3130_v23 = vpop.eup %3129 }
 0xf86   :  { %1517 = vrot.lane.b32.xlu1 %v3130_v23, %s3234_s0 }
 0xff4   :  { %v1691_v24 = vpop.permute.xlu1 %1690 }
 0xff5   :  { %v1693_v25 = vpop.permute.xlu0 %1692  ;;  %v1696_v26 = vmul.f32 %v3120_v38, %v1691_v24 }
 0xff6   :  { %v1697_v57 = vmul.f32 %v3122_v58, %v1693_v25 }
 0xff7   :  { %v1848_v47 = vrot.slane %v1696_v26, 5 }
 0xff8   :  { %v1700_v5 = vrot.slane %v1697_v57, 7  ;;  %v1518_v45 = vpop.permute.xlu1 %1517  ;;  %v1849_v28 = vrot.slane %v1697_v57, 4 }
 0xff9   :  { %v3672_v29 = vmul.f32 %v3124_v34, %v1518_v45  ;;  %v1949_v45 = vrot.slane %v3661_v19, 7 }
 0xffa   :  { %v1702_v31 = vsel %vm1701_vm9, %v1700_v5, %v1696_v26  ;;  %v1850_v48 = vsel %vm267_vm2, %v1849_v28, %v1848_v47 }
 0xffb   :  { %1703 = vrot.lane.b32.xlu0 %v1702_v31, %s3235_s22  ;;  %v1706_v32 = vrot.slane %v3672_v29, 3  ;;  %v1948_v31 = vrot.slane %v3659_v7, 7 }
 0xffd   :  { %1707 = vrot.lane.b32.xlu1 %v1706_v32, %s3234_s0 }
 0xfff   :  { %1851 = vrot.lane.b32.xlu0 %v1850_v48, %s3235_s22 }
0x106d   :  { %v1704_v33 = vpop.permute.xlu0 %1703 }
0x106f   :  { %v1708_v50 = vpop.permute.xlu1 %1707 }
0x1070   :  { %v1710_v35 = vsel %vm136_vm3, %v1704_v33, %v1708_v50 }
0x1071   :  { %v1852_v37 = vpop.permute.xlu0 %1851  ;;  %v1712_v51 = vrot.slane %v1710_v35, 5 }
0x1072   :  { %2923 = vmatmul.mubr.msk.f32.vlgmr.msra.gmra.mxu0 %vm136_vm3, %v1852_v37 }
0x1073   :  { %2926 = vmatpush3.msra.mxu0 %v3681_v39  ;;  %2941 = vmatprep.mubr.msk.f32.mxu0 %vm3233_vm0, %v3232_v0 }
0x1074   :  { %2912 = vmatmul.mubr.msk.f32.vlgmr.msra.gmra.mxu1 %vm277_vm4, %v1712_v51  ;;  %2927 = vmatprep.subr.mxu0 %v3232_v0 }
0x1075   :  { %2928 = vmatpush3.msra.mxu0 %v3688_v16  ;;  %2945 = vmatpush3.msra.mxu1 %v3617_v27  ;;  %v3706_v27 = vld [vmem:[#allocation3 + $0x48] sm:$0xff] }
0x1076   :  { %2929 = vmatprep.subr.mxu0 %v3232_v0  ;;  %2946 = vmatprep.subr.mxu1 %v3232_v0 }
0x1077   :  { %2930 = vmatpush3.msra.mxu0 %v3694_v17  ;;  %2947 = vmatpush3.msra.mxu1 %v3623_v42  ;;  %v3713_v42 = vld [vmem:[#allocation3 + $0x40] sm:$0xff] }
0x1078   :  { %2931 = vmatprep.subr.mxu0 %v3232_v0  ;;  %2948 = vmatprep.subr.mxu1 %v3232_v0 }
0x1079   :  { %2932 = vmatpush3.msra.mxu0 %v3700_v46  ;;  %2949 = vmatpush3.msra.mxu1 %v3629_v43  ;;  %v3718_v43 = vld [vmem:[#allocation3 + $0x38] sm:$0xff] }
0x107a   :  { %2933 = vmatprep.subr.mxu0 %v3232_v0  ;;  %2950 = vmatprep.subr.mxu1 %v3232_v0 }
0x107b   :  { %2934 = vmatpush3.msra.mxu0 %v3706_v27  ;;  %2951 = vmatpush3.msra.mxu1 %v3635_v44  ;;  %v3722_v44 = vld [vmem:[#allocation3 + $0x30] sm:$0xff] }
0x107c   :  { %2935 = vmatprep.subr.mxu0 %v3232_v0  ;;  %2952 = vmatprep.mubr.msk.f32.mxu1 %vm3233_vm0, %v3232_v0 }
0x107d   :  { %2936 = vmatpush3.msra.mxu0 %v3713_v42  ;;  %2955 = vmatprep.subr.mxu1 %v3232_v0 }
0x107e   :  { %2937 = vmatprep.subr.mxu0 %v3232_v0 }
0x107f   :  { %2938 = vmatpush3.msra.mxu0 %v3718_v43 }
0x1080   :  { %2939 = vmatprep.subr.mxu0 %v3232_v0 }
0x1081   :  { %2940 = vmatpush3.msra.mxu0 %v3722_v44 }
0x1132   :  { %v1921_v52 = vpop.f32.mrf.mxu0 }
0x1133   :  { %v1926_v53 = vrot.slane %v1921_v52, 2  ;;  %v1927_v55 = vrot.slane %v1921_v52, 3 }
0x1134   :  { %v1781_v56 = vpop.f32.mrf.mxu1  ;;  %v2924_v21 = vpop.f32.mrf.mxu0 }
0x1135   :  { %v1931_v38 = vadd.f32 %v1927_v55, %v3307_v14  ;;  %v1930_v58 = vadd.f32 %v1926_v53, %v3309_v18  ;;  %v1782_v60 = vadd.f32 %v1781_v56, %v3392_v3 }
0x1136   :  { %v2913_v41 = vpop.f32.mrf.mxu1 }
0x1137   :  { %3131 = vtanh.f32 %v1931_v38  ;;  %v2595_v36 = vmul.f32 -1.442695, %v1931_v38  ;;  %v2594_v11 = vmul.f32 -1.442695, %v1930_v58  ;;  %v2592_v13 = vmul.f32 -1.442695, %v1782_v60 }
0x1138   :  { %3133 = vtanh.f32 %v1930_v58 }
0x1139   :  { %3135 = vtanh.f32 %v1782_v60 }
0x113a   :  { %3137 = vpow2.f32 %v2595_v36 }
0x113b   :  { %3139 = vpow2.f32 %v2594_v11 }
0x113c   :  { %3141 = vpow2.f32 %v2592_v13 }
0x1144   :  { %v3132_v63 = vpop.eup %3131 }
0x1145   :  { %1958 = vrot.lane.b32.xlu1 %v3132_v63, %s3234_s0  ;;  %v3134_v2 = vpop.eup %3133 }
0x1146   :  { %v3136_v34 = vpop.eup %3135 }
0x1147   :  { %1794 = vrot.lane.b32.xlu0 %v3136_v34, %s3234_s0  ;;  %v3138_v1 = vpop.eup %3137 }
0x1148   :  { %v3140_v4 = vpop.eup %3139  ;;  %v1939_v6 = vadd.f32 1.0, %v3138_v1 }
0x1149   :  { %1956 = vrot.lane.b32.xlu1 %v3134_v2, %s3234_s0  ;;  %v3142_v40 = vpop.eup %3141  ;;  %v1938_v15 = vadd.f32 1.0, %v3140_v4 }
0x114a   :  { %3143 = vrcp.f32 %v1939_v6  ;;  %v1788_v49 = vadd.f32 1.0, %v3142_v40 }
0x114b   :  { %3145 = vrcp.f32 %v1938_v15 }
0x114c   :  { %3147 = vrcp.f32 %v1788_v49 }
0x1157   :  { %v3144_v54 = vpop.eup %3143 }
0x1158   :  { %v3146_v23 = vpop.eup %3145  ;;  %v1953_v47 = vmul.f32 %v3144_v54, %v1949_v45 }
0x1159   :  { %v3148_v24 = vpop.eup %3147  ;;  %v1952_v33 = vmul.f32 %v3146_v23, %v1948_v31 }
0x115a   :  { %v1792_v48 = vmul.f32 %v3148_v24, %v3666_v22 }
0x11b7   :  { %v1959_v61 = vpop.permute.xlu1 %1958 }
0x11b8   :  { %v1963_v62 = vmul.f32 %v3144_v54, %v1959_v61 }
0x11b9   :  { %v1795_v25 = vpop.permute.xlu0 %1794 }
0x11ba   :  { %1968 = vrot.lane.b32.xlu0 %v1963_v62, %s3235_s22  ;;  %v1797_v57 = vmul.f32 %v3148_v24, %v1795_v25 }
0x11bb   :  { %v1957_v26 = vpop.permute.xlu1 %1956 }
0x11bc   :  { %v1962_v5 = vmul.f32 %v3146_v23, %v1957_v26  ;;  %1799 = vrot.lane.b32.xlu1 %v1797_v57, %s3235_s22 }
0x11be   :  { %1966 = vrot.lane.b32.xlu0 %v1962_v5, %s3235_s22 }
0x122c   :  { %v1969_v28 = vpop.permute.xlu0 %1968 }
0x122d   :  { %v3736_v32 = vadd.f32 %v1969_v28, %v1953_v47 }
0x122e   :  { %v1800_v50 = vpop.permute.xlu1 %1799 }
0x122f   :  { %3149 = vtanh.f32 %v3736_v32  ;;  %v3740_v37 = vadd.f32 %v1800_v50, %v1792_v48 }
0x1230   :  { %v1967_v35 = vpop.permute.xlu0 %1966 }
0x1231   :  { %v3742_v51 = vadd.f32 %v1967_v35, %v1952_v33  ;;  %3151 = vtanh.f32 %v3740_v37 }
0x1233   :  { %3153 = vtanh.f32 %v3742_v51 }
0x123c   :  { %v3150_v19 = vpop.eup %3149 }
0x123d   :  { %1980 = vrot.lane.b32.xlu1 %v3150_v19, %s3234_s0 }
0x123e   :  { %v3152_v7 = vpop.eup %3151 }
0x123f   :  { %1805 = vrot.lane.b32.xlu0 %v3152_v7, %s3234_s0  ;;  %v2237_v7 = vrot.slane %v3736_v32, 7 }
0x1240   :  { %v3154_v52 = vpop.eup %3153 }
0x1241   :  { %1978 = vrot.lane.b32.xlu1 %v3154_v52, %s3234_s0  ;;  %v2236_v52 = vrot.slane %v3742_v51, 7 }
0x12af   :  { %v1981_v22 = vpop.permute.xlu1 %1980 }
0x12b0   :  { %v1985_v53 = vmul.f32 %v3144_v54, %v1981_v22 }
0x12b1   :  { %v1806_v55 = vpop.permute.xlu0 %1805 }
0x12b2   :  { %v3749_v56 = vmul.f32 %v3148_v24, %v1806_v55  ;;  %v1988_v38 = vrot.slane %v1985_v53, 7  ;;  %v2137_v2 = vrot.slane %v1985_v53, 5 }
0x12b3   :  { %v1979_v21 = vpop.permute.xlu1 %1978 }
0x12b4   :  { %v1984_v41 = vmul.f32 %v3146_v23, %v1979_v21  ;;  %v1994_v58 = vrot.slane %v3749_v56, 2 }
0x12b6   :  { %v2136_v60 = vrot.slane %v1984_v41, 6  ;;  %v1990_v63 = vsel %vm1989_vm10, %v1988_v38, %v1984_v41  ;;  %1995 = vrot.lane.b32.xlu1 %v1994_v58, %s3234_s0 }
0x12b7   :  { %1991 = vrot.lane.b32.xlu0 %v1990_v63, %s3235_s22 }
0x12b8   :  { %v2138_v34 = vsel %vm267_vm2, %v2137_v2, %v2136_v60 }
0x12bb   :  { %2139 = vrot.lane.b32.xlu0 %v2138_v34, %s3235_s22 }
0x1328   :  { %v1996_v36 = vpop.permute.xlu1 %1995 }
0x1329   :  { %v1992_v11 = vpop.permute.xlu0 %1991 }
0x132a   :  { %v1998_v13 = vsel %vm136_vm3, %v1992_v11, %v1996_v36 }
0x132b   :  { %v2000_v1 = vrot.slane %v1998_v13, 6 }
0x132d   :  { %v2140_v4 = vpop.permute.xlu0 %2139  ;;  %2942 = vmatmul.mubr.msk.f32.vlgmr.msra.gmra.mxu0 %vm277_vm4, %v2000_v1 }
0x132e   :  { %2953 = vmatmul.mubr.msk.f32.vlgmr.msra.gmra.mxu1 %vm136_vm3, %v2140_v4 }
0x132f   :  { %2956 = vmatpush3.msra.mxu1 %v3681_v39  ;;  %2971 = vmatprep.mubr.msk.f32.mxu1 %vm3233_vm0, %v3232_v0 }
0x1330   :  { %2957 = vmatprep.subr.mxu1 %v3232_v0 }
0x1331   :  { %2958 = vmatpush3.msra.mxu1 %v3688_v16 }
0x1332   :  { %2959 = vmatprep.subr.mxu1 %v3232_v0 }
0x1333   :  { %2960 = vmatpush3.msra.mxu1 %v3694_v17 }
0x1334   :  { %2961 = vmatprep.subr.mxu1 %v3232_v0 }
0x1335   :  { %2962 = vmatpush3.msra.mxu1 %v3700_v46 }
0x1336   :  { %2963 = vmatprep.subr.mxu1 %v3232_v0 }
0x1337   :  { %2964 = vmatpush3.msra.mxu1 %v3706_v27 }
0x1338   :  { %2965 = vmatprep.subr.mxu1 %v3232_v0 }
0x1339   :  { %2966 = vmatpush3.msra.mxu1 %v3713_v42 }
0x133a   :  { %2967 = vmatprep.subr.mxu1 %v3232_v0 }
0x133b   :  { %2968 = vmatpush3.msra.mxu1 %v3718_v43 }
0x133c   :  { %2969 = vmatprep.subr.mxu1 %v3232_v0 }
0x133d   :  { %2970 = vmatpush3.msra.mxu1 %v3722_v44 }
0x13ed   :  { %v2069_v39 = vpop.f32.mrf.mxu0 }
0x13ee   :  { %v2070_v16 = vadd.f32 %v2069_v39, %v3392_v3  ;;  %v2209_v17 = vpop.f32.mrf.mxu1 }
0x13ef   :  { %v2214_v46 = vrot.slane %v2209_v17, 1  ;;  %v2215_v6 = vrot.slane %v2209_v17, 2  ;;  %v2943_v40 = vpop.f32.mrf.mxu0 }
0x13f0   :  { %3155 = vtanh.f32 %v2070_v16  ;;  %v2954_v27 = vpop.f32.mrf.mxu1  ;;  %v2597_v54 = vmul.f32 -1.442695, %v2070_v16 }
0x13f1   :  { %v2218_v15 = vadd.f32 %v2214_v46, %v3309_v18  ;;  %v2219_v42 = vadd.f32 %v2215_v6, %v3307_v14 }
0x13f3   :  { %3157 = vtanh.f32 %v2218_v15  ;;  %v2599_v61 = vmul.f32 -1.442695, %v2218_v15  ;;  %v2600_v62 = vmul.f32 -1.442695, %v2219_v42 }
0x13f4   :  { %3159 = vtanh.f32 %v2219_v42 }
0x13f5   :  { %3161 = vpow2.f32 %v2597_v54 }
0x13f6   :  { %3163 = vpow2.f32 %v2599_v61 }
0x13f7   :  { %3165 = vpow2.f32 %v2600_v62 }
0x13fd   :  { %v3156_v43 = vpop.eup %3155 }
0x13fe   :  { %2082 = vrot.lane.b32.xlu1 %v3156_v43, %s3234_s0 }
0x1400   :  { %v3158_v49 = vpop.eup %3157 }
0x1401   :  { %v3160_v44 = vpop.eup %3159 }
0x1402   :  { %2246 = vrot.lane.b32.xlu0 %v3160_v44, %s3234_s0  ;;  %2244 = vrot.lane.b32.xlu1 %v3158_v49, %s3234_s0  ;;  %v3162_v18 = vpop.eup %3161  ;;  %v3236_v49 = vmov 0  }
0x1403   :  { %v3164_v23 = vpop.eup %3163  ;;  %v2076_v14 = vadd.f32 1.0, %v3162_v18  ;;  %2994 = vset.pattern.permute.xlu0 %v3236_v49  ;;  %v3237_v18 = vmov 1966171168  }
0x1404   :  { %v3166_v24 = vpop.eup %3165  ;;  %v2226_v25 = vadd.f32 1.0, %v3164_v23  ;;  %v377_v23 = vunpack.c.l.s4 %v3237_v18 }
0x1405   :  { %3167 = vrcp.f32 %v2076_v14  ;;  %v2227_v26 = vadd.f32 1.0, %v3166_v24 }
0x1406   :  { %3169 = vrcp.f32 %v2226_v25  ;;  %v378_v14 = vunpack.c.0.s8 %v377_v23 }
0x1407   :  { %3171 = vrcp.f32 %v2227_v26 }
0x1408   :  { %v3803_v24 = vsub.s32 %v378_v14, %v3301_v9 }
0x140a   :  { %v952_v26 = vrot.slane %v3540_v59, %v3803_v24 }
0x1412   :  { %v3168_v57 = vpop.eup %3167 }
0x1413   :  { %v3170_v47 = vpop.eup %3169  ;;  %v2080_v35 = vmul.f32 %v3168_v57, %v3740_v37 }
0x1414   :  { %v3172_v28 = vpop.eup %3171  ;;  %v2240_v55 = vmul.f32 %v3170_v47, %v2236_v52 }
0x1415   :  { %v2241_v53 = vmul.f32 %v3172_v28, %v2237_v7 }
0x1470   :  { %v2083_v5 = vpop.permute.xlu1 %2082 }
0x1471   :  { %v2085_v45 = vmul.f32 %v3168_v57, %v2083_v5  ;;  %v2430_v5 = vld [vmem:[%s3912_s1] sm:$0x3] }
0x1473   :  { %2087 = vrot.lane.b32.xlu0 %v2085_v45, %s3235_s22  ;;  %v960_v45 = vrot.slane %v952_v26, %v3803_v24 }
0x1474   :  { %v2247_v31 = vpop.permute.xlu0 %2246  ;;  %v2245_v48 = vpop.permute.xlu1 %2244 }
0x1475   :  { %v2251_v33 = vmul.f32 %v3172_v28, %v2247_v31  ;;  %v2250_v50 = vmul.f32 %v3170_v47, %v2245_v48  ;;  %v971_v48 = vrot.slane %v960_v45, %v3304_v10 }
0x1477   :  { %2256 = vrot.lane.b32.xlu1 %v2251_v33, %s3235_s22  ;;  %2254 = vrot.lane.b32.xlu0 %v2250_v50, %s3235_s22 }
0x14e5   :  { %v2088_v19 = vpop.permute.xlu0 %2087 }
0x14e6   :  { %v3788_v22 = vadd.f32 %v2088_v19, %v2080_v35  ;;  %v953_v19 = vcombine.high %v952_v26, %v952_v26  ;;  %v46_v26 = vld [vmem:[#allocation3 + $0x90] sm:$0xff] }
0x14e7   :  { %2974 = vmatprep.subr.mxu0 %v46_v26 }
0x14e8   :  { %3173 = vtanh.f32 %v3788_v22  ;;  %v967_v7 = vrot.slane %v953_v19, %v3803_v24  ;;  %2975 = vmatpush3.msra.mxu0 %v46_v26 }
0x14e9   :  { %v2257_v21 = vpop.permute.xlu1 %2256  ;;  %v2255_v38 = vpop.permute.xlu0 %2254 }
0x14ea   :  { %v2261_v41 = vadd.f32 %v2257_v21, %v2241_v53  ;;  %v2260_v58 = vadd.f32 %v2255_v38, %v2240_v55  ;;  %v975_v38 = vrot.slane %v967_v7, %v3304_v10 }
0x14ec   :  { %3175 = vtanh.f32 %v2261_v41 }
0x14ed   :  { %3177 = vtanh.f32 %v2260_v58 }
0x14f5   :  { %v3174_v60 = vpop.eup %3173 }
0x14f6   :  { %2093 = vrot.lane.b32.xlu1 %v3174_v60, %s3234_s0 }
0x14f9   :  { %v3176_v37 = vpop.eup %3175 }
0x14fa   :  { %v3178_v63 = vpop.eup %3177  ;;  %2268 = vrot.lane.b32.xlu0 %v3176_v37, %s3234_s0 }
0x14fb   :  { %2266 = vrot.lane.b32.xlu1 %v3178_v63, %s3234_s0 }
0x1568   :  { %v2094_v32 = vpop.permute.xlu1 %2093 }
0x1569   :  { %v2096_v36 = vmul.f32 %v3168_v57, %v2094_v32 }
0x156b   :  { %v2283_v1 = vrot.slane %v2096_v36, 1  ;;  %v2104_v59 = vrot.slane %v2096_v36, %v3803_v24  ;;  %v665_v36 = vrot.slane %v3478_v30, %v3803_v24 }
0x156c   :  { %v2269_v51 = vpop.permute.xlu0 %2268 }
0x156d   :  { %v2273_v2 = vmul.f32 %v3172_v28, %v2269_v51  ;;  %v2267_v34 = vpop.permute.xlu1 %2266  ;;  %v382_v28 = vrot.slane %v3417_v12, %v3803_v24  ;;  %v2112_v35 = vrot.slane %v2104_v59, %v3803_v24  ;;  %v2105_v21 = vcombine.high %v2104_v59, %v2104_v59 }
0x156e   :  { %v2272_v11 = vmul.f32 %v3170_v47, %v2267_v34  ;;  %v1528_v47 = vrot.slane %v3672_v29, %v3803_v24  ;;  %v2432_v51 = vand.u32 127, %v50_v8  ;;  %v673_v8 = vrot.slane %v665_v36, %v3803_v24 }
0x156f   :  { %v2276_v13 = vrot.slane %v2273_v2, 7  ;;  %v383_v33 = vcombine.high %v382_v28, %v382_v28  ;;  %v2123_v12 = vrot.slane %v2112_v35, %v3304_v10  ;;  %v2119_v41 = vrot.slane %v2105_v21, %v3803_v24 }
0x1570   :  { %2277 = vrot.lane.b32.xlu0 %v2272_v11, %s3235_s22  ;;  %v1536_v31 = vrot.slane %v1528_v47, %v3803_v24  ;;  %v1529_v52 = vcombine.high %v1528_v47, %v1528_v47  ;;  %v390_v34 = vrot.slane %v382_v28, %v3803_v24  ;;  %v45_v47 = vld [vmem:[#allocation3 + $0x88] sm:$0xff]  ;;  %v44_v28 = vld [vmem:[#allocation3 + $0x80] sm:$0xff]  ;;  %v2448_v35 = vsub.s32 1, %v3301_v9 }
0x1571   :  { %2279 = vrot.lane.b32.xlu1 %v2276_v13, %s3235_s22  ;;  %v397_v29 = vrot.slane %v383_v33, %v3803_v24  ;;  %v2127_v60 = vrot.slane %v2119_v41, %v3304_v10  ;;  %2976 = vmatprep.subr.mxu0 %v45_v47 }
0x1572   :  { %v1547_v50 = vrot.slane %v1536_v31, %v3304_v10  ;;  %v1543_v55 = vrot.slane %v1529_v52, %v3803_v24  ;;  %v401_v30 = vrot.slane %v390_v34, %v3304_v10  ;;  %2977 = vmatpush3.msra.mxu0 %v45_v47 }
0x1573   :  { %v405_v53 = vrot.slane %v397_v29, %v3304_v10  ;;  %2978 = vmatprep.subr.mxu0 %v44_v28 }
0x1574   :  { %2284 = vrot.lane.b32.xlu0 %v2283_v1, %s3234_s0  ;;  %v1551_v58 = vrot.slane %v1543_v55, %v3304_v10  ;;  %2979 = vmatpush3.msra.mxu0 %v44_v28 }
0x15e2   :  { %v2278_v4 = vpop.permute.xlu0 %2277 }
0x15e3   :  { %v2280_v39 = vpop.permute.xlu1 %2279 }
0x15e6   :  { %v2285_v16 = vpop.permute.xlu0 %2284 }
0x15e7   :  { %v2287_v17 = vsel %vm136_vm3, %v2278_v4, %v2285_v16  ;;  %v2288_v46 = vsel %vm136_vm3, %v2280_v39, %v2285_v16  ;;  %v1240_v4 = vrot.slane %v3602_v20, %v3803_v24  ;;  %v1816_v16 = vrot.slane %v3749_v56, %v3803_v24 }
0x15e8   :  { %v2292_v6 = vrot.slane %v2287_v17, 7  ;;  %v2293_v40 = vrot.slane %v2288_v46, 7  ;;  %v684_v17 = vrot.slane %v673_v8, %v3304_v10  ;;  %v666_v20 = vcombine.high %v665_v36, %v665_v36 }
0x15e9   :  { %v1248_v39 = vrot.slane %v1240_v4, %v3803_v24  ;;  %v1241_v56 = vcombine.high %v1240_v4, %v1240_v4 }
0x15ea   :  { %v2294_v27 = vsel %vm2291_vm11, %v2292_v6, %v2293_v40  ;;  %v1824_v40 = vrot.slane %v1816_v16, %v3803_v24 }
0x15eb   :  { %2972 = vmatmul.mubr.msk.f32.vlgmr.msra.gmra.mxu1 %vm277_vm4, %v2294_v27  ;;  %v1259_v6 = vrot.slane %v1248_v39, %v3304_v10  ;;  %v1255_v49 = vrot.slane %v1241_v56, %v3803_v24 }
0x15ed   :  { %v1263_v18 = vrot.slane %v1255_v49, %v3304_v10 }
0x16ab   :  { %v2363_v15 = vpop.f32.mrf.mxu1 }
0x16ac   :  { %v2364_v42 = vadd.f32 %v2363_v15, %v3392_v3  ;;  %v680_v15 = vrot.slane %v666_v20, %v3803_v24 }
0x16ad   :  { %v2973_v43 = vpop.f32.mrf.mxu1 }
0x16ae   :  { %3179 = vtanh.f32 %v2364_v42  ;;  %v2602_v54 = vmul.f32 -1.442695, %v2364_v42  ;;  %v1835_v42 = vrot.slane %v1824_v40, %v3304_v10 }
0x16b0   :  { %3181 = vpow2.f32 %v2602_v54  ;;  %v688_v54 = vrot.slane %v680_v15, %v3304_v10 }
0x16bb   :  { %v3180_v44 = vpop.eup %3179 }
0x16bc   :  { %2376 = vrot.lane.b32.xlu1 %v3180_v44, %s3234_s0  ;;  %v1817_v44 = vcombine.high %v1816_v16, %v1816_v16 }
0x16bd   :  { %v3182_v61 = vpop.eup %3181 }
0x16be   :  { %v2370_v62 = vadd.f32 1.0, %v3182_v61 }
0x16c0   :  { %3183 = vrcp.f32 %v2370_v62  ;;  %v1831_v62 = vrot.slane %v1817_v44, %v3803_v24 }
0x16c2   :  { %v1839_v14 = vrot.slane %v1831_v62, %v3304_v10 }
0x16cd   :  { %v3805_v25 = vpop.eup %3183 }
0x16ce   :  { %v2374_v37 = vmul.f32 %v3805_v25, %v3788_v22 }
0x172e   :  { %v2377_v3 = vpop.permute.xlu1 %2376 }
0x172f   :  { %v2379_v57 = vmul.f32 %v3805_v25, %v2377_v3 }
0x1731   :  { %2381 = vrot.lane.b32.xlu0 %v2379_v57, %s3235_s22 }
0x1735   :  { %2434 = vperm.xlu0 %2994, %v2430_v5  }
0x1739   :  { %976 = vrot.lane.b32.xlu0 %v971_v48, %s3235_s22 }
0x173d   :  { %1552 = vrot.lane.b32.xlu0 %v1547_v50, %s3235_s22  ;;  %v43_v50 = vld [vmem:[#allocation3 + $0x78] sm:$0xff] }
0x173e   :  { %2980 = vmatprep.subr.mxu0 %v43_v50 }
0x173f   :  { %2981 = vmatpush3.msra.mxu0 %v43_v50 }
0x1741   :  { %2128 = vrot.lane.b32.xlu0 %v2123_v12, %s3235_s22 }
0x1745   :  { %408 = vrot.lane.b32.xlu0 %v405_v53, %s3235_s22 }
0x1749   :  { %978 = vrot.lane.b32.xlu0 %v975_v38, %s3235_s22 }
0x174d   :  { %1554 = vrot.lane.b32.xlu0 %v1551_v58, %s3235_s22 }
0x1751   :  { %2130 = vrot.lane.b32.xlu0 %v2127_v60, %s3235_s22 }
0x17a3   :  { %v2382_v63 = vpop.permute.xlu0 %2381 }
0x17a4   :  { %v2384_v32 = vadd.f32 %v2382_v63, %v2374_v37  ;;  %v47_v63 = vld [vmem:[#allocation3 + $0x98] sm:$0xff] }
0x17a6   :  { %3185 = vtanh.f32 %v2384_v32  ;;  %v2460_v32 = vrot.slane %v47_v63, %v3304_v10 }
0x17b0   :  { %v2435_v2 = vpop.permute.xlu0 %2434 }
0x17b1   :  { %vm2436_vm12 = vcmp.lt.s32.totalorder %v2432_v51, %v2435_v2 }
0x17b2   :  { %v3847_v11 = vsel %vm2436_vm12, 1.0, %v3232_v0 }
0x17b3   :  { %v3186_v13 = vpop.eup %3185  ;;  %v2442_v22 = vrot.slane %v3847_v11, %v3304_v10  ;;  %v2449_v12 = vrot.slane %v3847_v11, %v2448_v35 }
0x17b4   :  { %v977_v1 = vpop.permute.xlu0 %976  ;;  %2387 = vrot.lane.b32.xlu1 %v3186_v13, %s3234_s0 }
0x17b5   :  { %982 = vst.msk [vmem:[#allocation2 + $0x2] sm:$0x1] %vm412_vm13, %v977_v1  ;;  %2444 = vbcast.lane.b32.xlu0 %v2442_v22, 256 }
0x17b8   :  { %v1553_v0 = vpop.permute.xlu0 %1552  ;;  %406 = vrot.lane.b32.xlu1 %v401_v30, %s3235_s22 }
0x17b9   :  { %1558 = vst.msk [vmem:[#allocation2 + $0x4] sm:$0x1] %vm412_vm13, %v1553_v0 }
0x17bc   :  { %v2129_v46 = vpop.permute.xlu0 %2128  ;;  %689 = vrot.lane.b32.xlu1 %v684_v17, %s3235_s22 }
0x17bd   :  { %2134 = vst.msk [vmem:[#allocation2 + $0x6] sm:$0x1] %vm412_vm13, %v2129_v46 }
0x17c0   :  { %v409_v27 = vpop.permute.xlu0 %408  ;;  %1264 = vrot.lane.b32.xlu1 %v1259_v6, %s3235_s22 }
0x17c1   :  { %414 = vst.msk [vmem:[#allocation2 + $0x8] sm:$0x1] %vm412_vm13, %v409_v27 }
0x17c4   :  { %v979_v43 = vpop.permute.xlu0 %978  ;;  %1840 = vrot.lane.b32.xlu1 %v1835_v42, %s3235_s22 }
0x17c5   :  { %983 = vst.msk [vmem:[#allocation2 + $0xa] sm:$0x1] %vm412_vm13, %v979_v43 }
0x17c8   :  { %v1555_v61 = vpop.permute.xlu0 %1554  ;;  %691 = vrot.lane.b32.xlu1 %v688_v54, %s3235_s22 }
0x17c9   :  { %1559 = vst.msk [vmem:[#allocation2 + $0xc] sm:$0x1] %vm412_vm13, %v1555_v61 }
0x17cc   :  { %v2131_v23 = vpop.permute.xlu0 %2130  ;;  %1266 = vrot.lane.b32.xlu1 %v1263_v18, %s3235_s22 }
0x17cd   :  { %2135 = vst.msk [vmem:[#allocation2 + $0xe] sm:$0x1] %vm412_vm13, %v2131_v23 }
0x17d0   :  { %1842 = vrot.lane.b32.xlu1 %v1839_v14, %s3235_s22 }
0x1826   :  { %v2388_v3 = vpop.permute.xlu1 %2387 }
0x1827   :  { %v2390_v57 = vmul.f32 %v3805_v25, %v2388_v3  ;;  %v2445_v21 = vpop.permute.xlu0 %2444 }
0x1829   :  { %v2398_v5 = vrot.slane %v2390_v57, %v3803_v24 }
0x182a   :  { %v407_v45 = vpop.permute.xlu1 %406 }
0x182b   :  { %v2399_v31 = vcombine.high %v2398_v5, %v2398_v5  ;;  %v2406_v59 = vrot.slane %v2398_v5, %v3803_v24  ;;  %413 = vst.msk [vmem:[#allocation2] sm:$0x1] %vm412_vm13, %v407_v45 }
0x182d   :  { %v2413_v48 = vrot.slane %v2399_v31, %v3803_v24  ;;  %v2417_v33 = vrot.slane %v2406_v59, %v3304_v10 }
0x182e   :  { %v690_v25 = vpop.permute.xlu1 %689 }
0x182f   :  { %695 = vst.msk [vmem:[#allocation2 + $0x1] sm:$0x1] %vm412_vm13, %v690_v25  ;;  %2422 = vrot.lane.b32.xlu1 %v2417_v33, %s3235_s22  ;;  %v2421_v29 = vrot.slane %v2413_v48, %v3304_v10 }
0x1832   :  { %v1265_v19 = vpop.permute.xlu1 %1264 }
0x1833   :  { %1270 = vst.msk [vmem:[#allocation2 + $0x3] sm:$0x1] %vm412_vm13, %v1265_v19  ;;  %2424 = vrot.lane.b32.xlu1 %v2421_v29, %s3235_s22 }
0x1836   :  { %v1841_v24 = vpop.permute.xlu1 %1840 }
0x1837   :  { %1846 = vst.msk [vmem:[#allocation2 + $0x5] sm:$0x1] %vm412_vm13, %v1841_v24  ;;  %2451 = vbcast.lane.b32.xlu1 %v2449_v12, 256 }
0x183a   :  { %v692_v9 = vpop.permute.xlu1 %691 }
0x183b   :  { %696 = vst.msk [vmem:[#allocation2 + $0x9] sm:$0x1] %vm412_vm13, %v692_v9 }
0x183e   :  { %v1267_v7 = vpop.permute.xlu1 %1266 }
0x183f   :  { %1271 = vst.msk [vmem:[#allocation2 + $0xb] sm:$0x1] %vm412_vm13, %v1267_v7 }
0x1842   :  { %v1843_v52 = vpop.permute.xlu1 %1842 }
0x1843   :  { %1847 = vst.msk [vmem:[#allocation2 + $0xd] sm:$0x1] %vm412_vm13, %v1843_v52 }
0x18a1   :  { %v2423_v53 = vpop.permute.xlu1 %2422 }
0x18a2   :  { %2428 = vst.msk [vmem:[#allocation2 + $0x7] sm:$0x1] %vm412_vm13, %v2423_v53 }
0x18a5   :  { %v2425_v55 = vpop.permute.xlu1 %2424 }
0x18a6   :  { %2429 = vst.msk [vmem:[#allocation2 + $0xf] sm:$0x1] %vm412_vm13, %v2425_v55 }
0x18a9   :  { %v2453_v38 = vld [vmem:[#allocation2] sm:$0xff]  ;;  %v2452_v58 = vpop.permute.xlu1 %2451 }
0x18aa   :  { %v2455_v41 = vmul.f32 %v2453_v38, %v2445_v21 }
0x18ac   :  { %2982 = vmatprep.mubr.msk.f32.mxu0 %vm136_vm3, %v2455_v41 }
0x18ad   :  { %v2454_v60 = vld [vmem:[#allocation2 + $0x8] sm:$0xff] }
0x18ae   :  { %v2456_v37 = vmul.f32 %v2454_v60, %v2452_v58 }
0x18b0   :  { %2983 = vmatmul.mubr.msk.f32.vlgmr.msra.gmra.mxu0 %vm136_vm3, %v2456_v37 }
0x1970   :  { %v2984_v51 = vpop.f32.mrf.mxu0 }
0x1971   :  { %v2539_v2 = vadd.f32 %v2984_v51, %v2460_v32 }
0x1972   :  { %v2533_v34 = vpop.f32.mrf.mxu0 }
0x1973   :  { %v2607_v36 = vmul.f32 -1.442695, %v2539_v2  ;;  %v2534_v11 = vadd.f32 %v2533_v34, %v2460_v32 }
0x1975   :  { %3187 = vpow2.f32 %v2607_v36  ;;  %v2606_v13 = vmul.f32 -1.442695, %v2534_v11 }
0x1977   :  { %3189 = vpow2.f32 %v2606_v13 }
0x1982   :  { %v3188_v22 = vpop.eup %3187 }
0x1983   :  { %v2549_v1 = vadd.f32 1.0, %v3188_v22 }
0x1984   :  { %v3190_v8 = vpop.eup %3189 }
0x1985   :  { %3191 = vrcp.f32 %v2549_v1  ;;  %v2548_v4 = vadd.f32 1.0, %v3190_v8 }
0x1987   :  { %3193 = vrcp.f32 %v2548_v4 }
0x1992   :  { %v3192_v30 = vpop.eup %3191 }
0x1993   :  { %2556 = vst.msk [vmem:[%s3914_s3 + $0x8] sm:$0xff] %vm2554_vm14, %v3192_v30 }
0x1994   :  { %v3194_v10 = vpop.eup %3193 }
0x1995   :  { %2555 = vst.msk [vmem:[%s3914_s3] sm:$0xff] %vm2554_vm14, %v3194_v10 }
0x1996   :  { %2561 = vsyncpa [#allocation4], 1 }

</bundles_post_ra>
